<compile_context>
chip_gen: v7x
topology: tpu7x:2x2x1
jax: 0.10.0
libtpu: 0.0.40
codegen_flags: <defaults>
</compile_context>

<pallas_src>
from functools import partial

import numpy as np
import jax
import jax.numpy as jnp
from jax.experimental import pallas as pl
from jax.experimental.pallas import tpu as pltpu


def block_kernel(x_ref, ln1_g_ref, ln1_b_ref, wqkv_ref, wproj_ref, bproj_ref,
                 ln2_g_ref, ln2_b_ref, w1_ref, b1_ref, w2_ref, b2_ref,
                 out_ref, o_scratch, *, n_head, head_size, ffn_chunk, eps=1e-5):
    Bb, T, C = x_ref.shape
    R = Bb * T
    x = x_ref[...].reshape(R, C)          # lane-dense 2-D working slab (fp32)

    def layernorm(z, g, b):               # fp32 stats, biased variance (torch LN)
        mu = jnp.mean(z, axis=-1, keepdims=True)
        var = jnp.mean((z - mu) ** 2, axis=-1, keepdims=True)
        return (z - mu) * jax.lax.rsqrt(var + eps) * g + b

    # ---------------- self-attention branch ----------------
    xn = layernorm(x, ln1_g_ref[...], ln1_b_ref[...])
    # Fused QKV: one big bf16 MXU matmul, fp32 accumulation.
    # 1/sqrt(head_size) is pre-folded into the Q columns in prepare_params.
    qkv = jnp.dot(xn.astype(jnp.bfloat16), wqkv_ref[...],
                  preferred_element_type=jnp.float32)            # (R, 3C) fp32
    q = qkv[:, 0 * C:1 * C].reshape(Bb, T, C)
    k = qkv[:, 1 * C:2 * C].reshape(Bb, T, C)
    v = qkv[:, 2 * C:3 * C].reshape(Bb, T, C)

    # Causal additive bias (finite -1e30), built once, reused by all heads.
    row = jax.lax.broadcasted_iota(jnp.int32, (T, T), 0)
    col = jax.lax.broadcasted_iota(jnp.int32, (T, T), 1)
    mask_bias = jnp.where(row >= col, 0.0, -1e30).astype(jnp.float32)

    # Per-head attention (batched over the batch dim with 3-D einsums); head
    # outputs land in a (Bb, T, C) VMEM scratch so the output projection is a
    # single K=C matmul instead of n_head K=head_size matmuls.
    for h in range(n_head):                          # static loop over heads
        s = h * head_size
        qh = q[:, :, s:s + head_size].astype(jnp.bfloat16)
        kh = k[:, :, s:s + head_size].astype(jnp.bfloat16)
        vh = v[:, :, s:s + head_size].astype(jnp.bfloat16)
        wei = jnp.einsum('btd,bsd->bts', qh, kh,
                         preferred_element_type=jnp.float32)     # (Bb, T, T)
        wei = wei + mask_bias
        wei = wei - jnp.max(wei, axis=-1, keepdims=True)
        p = jnp.exp(wei)
        p = p * pl.reciprocal(jnp.sum(p, axis=-1, keepdims=True), approx=True)
        oh = jnp.einsum('bts,bsd->btd', p.astype(jnp.bfloat16), vh,
                        preferred_element_type=jnp.float32)      # (Bb, T, hs)
        o_scratch[:, :, s:s + head_size] = oh

    o = o_scratch[...].reshape(R, C).astype(jnp.bfloat16)
    sa = jnp.dot(o, wproj_ref[...],
                 preferred_element_type=jnp.float32) + bproj_ref[...]
    x1 = x + sa

    # ---------------- feed-forward branch (hidden dim tiled) ----------------
    x1n = layernorm(x1, ln2_g_ref[...], ln2_b_ref[...]).astype(jnp.bfloat16)
    H = w1_ref.shape[1]
    ff = jnp.zeros((R, C), jnp.float32)
    for c0 in range(0, H, ffn_chunk):                # static loop over chunks
        c1 = min(c0 + ffn_chunk, H)
        h1 = jnp.dot(x1n, w1_ref[:, c0:c1],
                     preferred_element_type=jnp.float32) + b1_ref[:, c0:c1]
        h1 = jnp.maximum(h1, 0.0).astype(jnp.bfloat16)
        ff = ff + jnp.dot(h1, w2_ref[c0:c1, :],
                          preferred_element_type=jnp.float32)

    out_ref[...] = (x1 + ff + b2_ref[...]).reshape(Bb, T, C).astype(out_ref.dtype)


def prepare_params(params, n_head):
    """One-time parameter packing (do NOT call per forward step):
    fold 1/sqrt(head_size) into the Q weight, fuse Q/K/V into one (C, 3C)
    weight, cast all matmul weights to bf16 (MXU-native). LayerNorm params and
    biases stay fp32."""
    C = params['wq'].shape[0]
    head_size = C // n_head
    scale = jnp.float32(head_size ** -0.5)
    wqkv = jnp.concatenate([params['wq'] * scale, params['wk'], params['wv']],
                           axis=1).astype(jnp.bfloat16)          # (C, 3C)
    return {
        'ln1_g': params['ln1_g'].astype(jnp.float32),
        'ln1_b': params['ln1_b'].astype(jnp.float32),
        'ln2_g': params['ln2_g'].astype(jnp.float32),
        'ln2_b': params['ln2_b'].astype(jnp.float32),
        'wqkv': wqkv,
        'wproj': params['wproj'].astype(jnp.bfloat16),
        'bproj': params['bproj'].astype(jnp.float32),
        'w1': params['w1'].astype(jnp.bfloat16),
        'b1': params['b1'].astype(jnp.float32),
        'w2': params['w2'].astype(jnp.bfloat16),
        'b2': params['b2'].astype(jnp.float32),
    }


def _choose_batch_block(B, T, C, ffn_chunk, weight_vmem_bytes,
                        budget_bytes=40 * 1024 * 1024):
    """Largest batch block that fits a per-generation-safe VMEM budget while
    keeping at least 2 grid steps (v7x megacore / v5e-v6e pipelining)."""
    best = 1
    for d in range(1, B + 1):
        if B % d != 0:
            continue
        if B > 1 and B // d < 2:
            continue
        R = d * T
        act_bytes = 4 * (4 * R * C          # x tile in/out, double-buffered
                         + 7 * R * C        # xn, qkv, head-out scratch, sa/ff
                         + 3 * d * T * T    # one head's scores/probs
                         + 2 * R * ffn_chunk)
        if act_bytes + weight_vmem_bytes <= budget_bytes:
            best = d
    return best


def block_forward(x, p, n_head, *, batch_block=None):
    """p must come from prepare_params()."""
    B, T, C = x.shape
    head_size = C // n_head
    H = 4 * C
    ffn_chunk = min(H, 1024)

    weights = (p['ln1_g'], p['ln1_b'], p['wqkv'], p['wproj'], p['bproj'],
               p['ln2_g'], p['ln2_b'], p['w1'], p['b1'], p['w2'], p['b2'])
    weight_bytes = sum(int(w.size) * w.dtype.itemsize for w in weights)
    weight_vmem_bytes = 2 * weight_bytes   # default BlockSpec double-buffering

    if batch_block is None:
        batch_block = _choose_batch_block(B, T, C, ffn_chunk, weight_vmem_bytes)
    assert B % batch_block == 0

    def full_spec(a):
        nd = a.ndim
        return pl.BlockSpec(a.shape, lambda b, _nd=nd: (0,) * _nd)

    in_specs = [pl.BlockSpec((batch_block, T, C), lambda b: (b, 0, 0))] + \
               [full_spec(w) for w in weights]
    out_spec = pl.BlockSpec((batch_block, T, C), lambda b: (b, 0, 0))

    flops = int(2 * B * T * C * 3 * C        # fused QKV
                + 4 * B * T * T * C          # scores + attention*V
                + 2 * B * T * C * C          # output projection
                + 4 * B * T * C * H)         # FFN (C -> 4C -> C)
    transcendentals = int(B * n_head * T * T)          # softmax exp
    # x in/out (fp32) + weights once (constant index maps stay resident).
    bytes_accessed = int(2 * 4 * B * T * C + weight_bytes)

    kernel = partial(block_kernel, n_head=n_head, head_size=head_size,
                     ffn_chunk=ffn_chunk)
    return pl.pallas_call(
        kernel,
        out_shape=jax.ShapeDtypeStruct((B, T, C), x.dtype),
        grid_spec=pltpu.PrefetchScalarGridSpec(
            num_scalar_prefetch=0,
            grid=(B // batch_block,),
            in_specs=in_specs,
            out_specs=out_spec,
            scratch_shapes=[pltpu.VMEM((batch_block, T, C), jnp.float32)]),
        compiler_params=pltpu.CompilerParams(
            dimension_semantics=("parallel",),
            vmem_limit_bytes=48 * 1024 * 1024),
        cost_estimate=pl.CostEstimate(
            flops=flops,
            transcendentals=transcendentals,
            bytes_accessed=bytes_accessed),
    )(x, *weights)


def init_params(key, n_embd):
    ks = jax.random.split(key, 8)
    s = 0.02
    return {
        'ln1_g': jnp.ones((1, n_embd), jnp.float32),
        'ln1_b': jnp.zeros((1, n_embd), jnp.float32),
        'ln2_g': jnp.ones((1, n_embd), jnp.float32),
        'ln2_b': jnp.zeros((1, n_embd), jnp.float32),
        # per-head q/k/v weights packed along the output axis (head h owns
        # columns [h*hs, (h+1)*hs)), matching torch.cat of per-head outputs.
        'wq': s * jax.random.normal(ks[0], (n_embd, n_embd), jnp.float32),
        'wk': s * jax.random.normal(ks[1], (n_embd, n_embd), jnp.float32),
        'wv': s * jax.random.normal(ks[2], (n_embd, n_embd), jnp.float32),
        'wproj': s * jax.random.normal(ks[3], (n_embd, n_embd), jnp.float32),
        'bproj': s * jax.random.normal(ks[4], (1, n_embd), jnp.float32),
        'w1': s * jax.random.normal(ks[5], (n_embd, 4 * n_embd), jnp.float32),
        'b1': s * jax.random.normal(ks[6], (1, 4 * n_embd), jnp.float32),
        'w2': s * jax.random.normal(ks[7], (4 * n_embd, n_embd), jnp.float32),
        'b2': jnp.zeros((1, n_embd), jnp.float32),
    }


def block_reference(x, p, n_head, eps=1e-5):
    """Pure-JAX fp32 reference mirroring the PyTorch forward (eval mode)."""
    B, T, C = x.shape
    hs = C // n_head

    def ln(z, g, b):
        mu = jnp.mean(z, -1, keepdims=True)
        var = jnp.mean((z - mu) ** 2, -1, keepdims=True)
        return (z - mu) / jnp.sqrt(var + eps) * g + b

    xn = ln(x, p['ln1_g'][0], p['ln1_b'][0])
    q = xn @ p['wq']; k = xn @ p['wk']; v = xn @ p['wv']
    mask = jnp.tril(jnp.ones((T, T), bool))
    outs = []
    for h in range(n_head):
        sl = slice(h * hs, (h + 1) * hs)
        wei = q[..., sl] @ jnp.swapaxes(k[..., sl], -2, -1) * hs ** (-0.5)
        wei = jnp.where(mask, wei, -jnp.inf)
        wei = jax.nn.softmax(wei, axis=-1)
        outs.append(wei @ v[..., sl])
    att = jnp.concatenate(outs, -1)
    x1 = x + att @ p['wproj'] + p['bproj'][0]
    x1n = ln(x1, p['ln2_g'][0], p['ln2_b'][0])
    ff = jnp.maximum(x1n @ p['w1'] + p['b1'][0], 0.0) @ p['w2'] + p['b2'][0]
    return x1 + ff


if __name__ == "__main__":
    B, T, n_embd, n_head = 8, 8, 32, 4   # block_size == T
    key = jax.random.PRNGKey(0)
    kx, kp = jax.random.split(key)
    x = jax.random.normal(kx, (B, T, n_embd), jnp.float32)
    params = init_params(kp, n_embd)
    prepped = prepare_params(params, n_head)   # one-time packing / bf16 cast

    ref = block_reference(x, params, n_head)

    # Default batch blocking (budget-derived, guarantees grid >= 2).
    out = jax.block_until_ready(block_forward(x, prepped, n_head))
    # bf16 MXU operands (fp32 accumulation) -> bf16-appropriate tolerance.
    np.testing.assert_allclose(np.asarray(out), np.asarray(ref),
                               atol=2e-2, rtol=2e-2)

    # Explicit smaller batch block (exercises the multi-step index map).
    out2 = jax.block_until_ready(block_forward(x, prepped, n_head, batch_block=2))
    np.testing.assert_allclose(np.asarray(out2), np.asarray(ref),
                               atol=2e-2, rtol=2e-2)

    print("KERNEL_OK")
</pallas_src>

<mosaic_0001>
module attributes {stable_mosaic.version = 11 : i64} {
  func.func @block_kernel(%arg0: i32, %arg1: memref<4x8x32xf32, #tpu.memory_space<vmem>>, %arg2: memref<1x32xf32, #tpu.memory_space<vmem>>, %arg3: memref<1x32xf32, #tpu.memory_space<vmem>>, %arg4: memref<32x96xbf16, #tpu.memory_space<vmem>>, %arg5: memref<32x32xbf16, #tpu.memory_space<vmem>>, %arg6: memref<1x32xf32, #tpu.memory_space<vmem>>, %arg7: memref<1x32xf32, #tpu.memory_space<vmem>>, %arg8: memref<1x32xf32, #tpu.memory_space<vmem>>, %arg9: memref<32x128xbf16, #tpu.memory_space<vmem>>, %arg10: memref<1x128xf32, #tpu.memory_space<vmem>>, %arg11: memref<128x32xbf16, #tpu.memory_space<vmem>>, %arg12: memref<1x32xf32, #tpu.memory_space<vmem>>, %arg13: memref<4x8x32xf32, #tpu.memory_space<vmem>>, %arg14: memref<4x8x32xf32, #tpu.memory_space<vmem>>) attributes {dimension_semantics = [#tpu.dimension_semantics<parallel>], iteration_bounds = array<i64: 2>, scalar_prefetch = 0 : i64, scratch_operands = 1 : i64, tpu.core_type = #tpu.core_type<tc>, window_params = [{transform_indices = @transform_0, window_bounds = array<i64: 4, 8, 32>}, {pipeline_mode = #tpu.pipeline_mode<synchronous>, transform_indices = @transform_1, window_bounds = array<i64: 1, 32>}, {pipeline_mode = #tpu.pipeline_mode<synchronous>, transform_indices = @transform_2, window_bounds = array<i64: 1, 32>}, {pipeline_mode = #tpu.pipeline_mode<synchronous>, transform_indices = @transform_3, window_bounds = array<i64: 32, 96>}, {pipeline_mode = #tpu.pipeline_mode<synchronous>, transform_indices = @transform_4, window_bounds = array<i64: 32, 32>}, {pipeline_mode = #tpu.pipeline_mode<synchronous>, transform_indices = @transform_5, window_bounds = array<i64: 1, 32>}, {pipeline_mode = #tpu.pipeline_mode<synchronous>, transform_indices = @transform_6, window_bounds = array<i64: 1, 32>}, {pipeline_mode = #tpu.pipeline_mode<synchronous>, transform_indices = @transform_7, window_bounds = array<i64: 1, 32>}, {pipeline_mode = #tpu.pipeline_mode<synchronous>, transform_indices = @transform_8, window_bounds = array<i64: 32, 128>}, {pipeline_mode = #tpu.pipeline_mode<synchronous>, transform_indices = @transform_9, window_bounds = array<i64: 1, 128>}, {pipeline_mode = #tpu.pipeline_mode<synchronous>, transform_indices = @transform_10, window_bounds = array<i64: 128, 32>}, {pipeline_mode = #tpu.pipeline_mode<synchronous>, transform_indices = @transform_11, window_bounds = array<i64: 1, 32>}, {transform_indices = @transform_12, window_bounds = array<i64: 4, 8, 32>}]} {
    %c0 = arith.constant 0 : index
    %c0_0 = arith.constant 0 : index
    %c0_1 = arith.constant 0 : index
    %0 = vector.load %arg1[%c0, %c0_0, %c0_1] : memref<4x8x32xf32, #tpu.memory_space<vmem>>, vector<4x8x32xf32>
    %1 = vector.shape_cast %0 : vector<4x8x32xf32> to vector<32x32xf32>
    %c0_2 = arith.constant 0 : index
    %c0_3 = arith.constant 0 : index
    %2 = vector.load %arg2[%c0_2, %c0_3] : memref<1x32xf32, #tpu.memory_space<vmem>>, vector<1x32xf32>
    %c0_4 = arith.constant 0 : index
    %c0_5 = arith.constant 0 : index
    %3 = vector.load %arg3[%c0_4, %c0_5] : memref<1x32xf32, #tpu.memory_space<vmem>>, vector<1x32xf32>
    %cst = arith.constant dense<0.000000e+00> : vector<32xf32>
    %4 = vector.multi_reduction <add>, %1, %cst [1] : vector<32x32xf32> to vector<32xf32>
    %5 = vector.shape_cast %4 : vector<32xf32> to vector<32x1xf32>
    %cst_6 = arith.constant 3.200000e+01 : f32
    %6 = vector.broadcast %cst_6 : f32 to vector<32x1xf32>
    %7 = arith.divf %5, %6 : vector<32x1xf32>
    %8 = vector.broadcast %7 : vector<32x1xf32> to vector<32x32xf32>
    %9 = arith.subf %1, %8 : vector<32x32xf32>
    %10 = arith.mulf %9, %9 : vector<32x32xf32>
    %cst_7 = arith.constant dense<0.000000e+00> : vector<32xf32>
    %11 = vector.multi_reduction <add>, %10, %cst_7 [1] : vector<32x32xf32> to vector<32xf32>
    %12 = vector.shape_cast %11 : vector<32xf32> to vector<32x1xf32>
    %cst_8 = arith.constant 3.200000e+01 : f32
    %13 = vector.broadcast %cst_8 : f32 to vector<32x1xf32>
    %14 = arith.divf %12, %13 : vector<32x1xf32>
    %15 = vector.broadcast %7 : vector<32x1xf32> to vector<32x32xf32>
    %16 = arith.subf %1, %15 : vector<32x32xf32>
    %cst_9 = arith.constant 9.99999974E-6 : f32
    %17 = vector.broadcast %cst_9 : f32 to vector<32x1xf32>
    %18 = arith.addf %14, %17 : vector<32x1xf32>
    %19 = math.rsqrt %18 : vector<32x1xf32>
    %20 = vector.broadcast %19 : vector<32x1xf32> to vector<32x32xf32>
    %21 = arith.mulf %16, %20 : vector<32x32xf32>
    %22 = vector.broadcast %2 : vector<1x32xf32> to vector<32x32xf32>
    %23 = arith.mulf %21, %22 : vector<32x32xf32>
    %24 = vector.broadcast %3 : vector<1x32xf32> to vector<32x32xf32>
    %25 = arith.addf %23, %24 : vector<32x32xf32>
    %26 = arith.truncf %25 : vector<32x32xf32> to vector<32x32xbf16>
    %c0_10 = arith.constant 0 : index
    %c0_11 = arith.constant 0 : index
    %27 = vector.load %arg4[%c0_10, %c0_11] : memref<32x96xbf16, #tpu.memory_space<vmem>>, vector<32x96xbf16>
    %cst_12 = arith.constant dense<0.000000e+00> : vector<32x96xf32>
    %28 = tpu.matmul %26, %27, %cst_12 {dimension_numbers = #tpu.dot_dimension_numbers<[1], [0], [0], [1], [0, 0, 1, 1], [], []>} : vector<32x32xbf16>, vector<32x96xbf16>, vector<32x96xf32> -> vector<32x96xf32>
    %29 = vector.extract_strided_slice %28 {offsets = [0, 0], sizes = [32, 32], strides = [1, 1]} : vector<32x96xf32> to vector<32x32xf32>
    %30 = vector.shape_cast %29 : vector<32x32xf32> to vector<4x8x32xf32>
    %31 = vector.extract_strided_slice %28 {offsets = [0, 32], sizes = [32, 32], strides = [1, 1]} : vector<32x96xf32> to vector<32x32xf32>
    %32 = vector.shape_cast %31 : vector<32x32xf32> to vector<4x8x32xf32>
    %33 = vector.extract_strided_slice %28 {offsets = [0, 64], sizes = [32, 32], strides = [1, 1]} : vector<32x96xf32> to vector<32x32xf32>
    %34 = vector.shape_cast %33 : vector<32x32xf32> to vector<4x8x32xf32>
    %35 = tpu.iota {dimensions = array<i32: 0>} : vector<8x8xi32>
    %36 = tpu.iota {dimensions = array<i32: 1>} : vector<8x8xi32>
    %37 = arith.cmpi sge, %35, %36 : vector<8x8xi32>
    %cst_13 = arith.constant 0.000000e+00 : f32
    %cst_14 = arith.constant -1.000000e+30 : f32
    %38 = vector.broadcast %cst_13 : f32 to vector<8x8xf32>
    %39 = vector.broadcast %cst_14 : f32 to vector<8x8xf32>
    %40 = arith.select %37, %38, %39 : vector<8x8xi1>, vector<8x8xf32>
    %41 = vector.extract_strided_slice %30 {offsets = [0, 0, 0], sizes = [4, 8, 8], strides = [1, 1, 1]} : vector<4x8x32xf32> to vector<4x8x8xf32>
    %42 = arith.truncf %41 : vector<4x8x8xf32> to vector<4x8x8xbf16>
    %43 = vector.extract_strided_slice %32 {offsets = [0, 0, 0], sizes = [4, 8, 8], strides = [1, 1, 1]} : vector<4x8x32xf32> to vector<4x8x8xf32>
    %44 = arith.truncf %43 : vector<4x8x8xf32> to vector<4x8x8xbf16>
    %45 = vector.extract_strided_slice %34 {offsets = [0, 0, 0], sizes = [4, 8, 8], strides = [1, 1, 1]} : vector<4x8x32xf32> to vector<4x8x8xf32>
    %46 = arith.truncf %45 : vector<4x8x8xf32> to vector<4x8x8xbf16>
    "tpu.trace_start"() <{level = 10 : i32, message = "btd,bsd->bts"}> : () -> ()
    %cst_15 = arith.constant dense<0.000000e+00> : vector<4x8x8xf32>
    %47 = tpu.matmul %42, %44, %cst_15 {dimension_numbers = #tpu.dot_dimension_numbers<[2], [2], [1], [1], [0, 0, 0, 1, 1, 1], [0], [0]>} : vector<4x8x8xbf16>, vector<4x8x8xbf16>, vector<4x8x8xf32> -> vector<4x8x8xf32>
    "tpu.trace_stop"() : () -> ()
    %48 = vector.shape_cast %40 : vector<8x8xf32> to vector<1x8x8xf32>
    %49 = vector.broadcast %48 : vector<1x8x8xf32> to vector<4x8x8xf32>
    %50 = arith.addf %47, %49 : vector<4x8x8xf32>
    %cst_16 = arith.constant dense<0xFF800000> : vector<4x8xf32>
    %51 = vector.multi_reduction <maximumf>, %50, %cst_16 [2] : vector<4x8x8xf32> to vector<4x8xf32>
    %52 = vector.shape_cast %51 : vector<4x8xf32> to vector<4x8x1xf32>
    %53 = vector.broadcast %52 : vector<4x8x1xf32> to vector<4x8x8xf32>
    %54 = arith.subf %50, %53 : vector<4x8x8xf32>
    %55 = math.exp %54 : vector<4x8x8xf32>
    %cst_17 = arith.constant dense<0.000000e+00> : vector<4x8xf32>
    %56 = vector.multi_reduction <add>, %55, %cst_17 [2] : vector<4x8x8xf32> to vector<4x8xf32>
    %57 = vector.shape_cast %56 : vector<4x8xf32> to vector<4x8x1xf32>
    %58 = tpu.reciprocal %57 {approx = true} : vector<4x8x1xf32> -> vector<4x8x1xf32>
    %59 = vector.broadcast %58 : vector<4x8x1xf32> to vector<4x8x8xf32>
    %60 = arith.mulf %55, %59 : vector<4x8x8xf32>
    %61 = arith.truncf %60 : vector<4x8x8xf32> to vector<4x8x8xbf16>
    "tpu.trace_start"() <{level = 10 : i32, message = "bts,bsd->btd"}> : () -> ()
    %cst_18 = arith.constant dense<0.000000e+00> : vector<4x8x8xf32>
    %62 = tpu.matmul %61, %46, %cst_18 {dimension_numbers = #tpu.dot_dimension_numbers<[2], [1], [1], [2], [0, 0, 0, 1, 1, 2], [0], [0]>} : vector<4x8x8xbf16>, vector<4x8x8xbf16>, vector<4x8x8xf32> -> vector<4x8x8xf32>
    "tpu.trace_stop"() : () -> ()
    %c0_19 = arith.constant 0 : index
    %c0_20 = arith.constant 0 : index
    %c0_21 = arith.constant 0 : index
    %63 = vector.load %arg14[%c0_19, %c0_20, %c0_21] : memref<4x8x32xf32, #tpu.memory_space<vmem>>, vector<4x8x8xf32>
    tpu.vector_store %arg14[%c0_19, %c0_20, %c0_21], %62 {strides = array<i32>} : memref<4x8x32xf32, #tpu.memory_space<vmem>>, vector<4x8x8xf32>,
    %64 = vector.extract_strided_slice %30 {offsets = [0, 0, 8], sizes = [4, 8, 8], strides = [1, 1, 1]} : vector<4x8x32xf32> to vector<4x8x8xf32>
    %65 = arith.truncf %64 : vector<4x8x8xf32> to vector<4x8x8xbf16>
    %66 = vector.extract_strided_slice %32 {offsets = [0, 0, 8], sizes = [4, 8, 8], strides = [1, 1, 1]} : vector<4x8x32xf32> to vector<4x8x8xf32>
    %67 = arith.truncf %66 : vector<4x8x8xf32> to vector<4x8x8xbf16>
    %68 = vector.extract_strided_slice %34 {offsets = [0, 0, 8], sizes = [4, 8, 8], strides = [1, 1, 1]} : vector<4x8x32xf32> to vector<4x8x8xf32>
    %69 = arith.truncf %68 : vector<4x8x8xf32> to vector<4x8x8xbf16>
    "tpu.trace_start"() <{level = 10 : i32, message = "btd,bsd->bts"}> : () -> ()
    %cst_22 = arith.constant dense<0.000000e+00> : vector<4x8x8xf32>
    %70 = tpu.matmul %65, %67, %cst_22 {dimension_numbers = #tpu.dot_dimension_numbers<[2], [2], [1], [1], [0, 0, 0, 1, 1, 1], [0], [0]>} : vector<4x8x8xbf16>, vector<4x8x8xbf16>, vector<4x8x8xf32> -> vector<4x8x8xf32>
    "tpu.trace_stop"() : () -> ()
    %71 = vector.shape_cast %40 : vector<8x8xf32> to vector<1x8x8xf32>
    %72 = vector.broadcast %71 : vector<1x8x8xf32> to vector<4x8x8xf32>
    %73 = arith.addf %70, %72 : vector<4x8x8xf32>
    %cst_23 = arith.constant dense<0xFF800000> : vector<4x8xf32>
    %74 = vector.multi_reduction <maximumf>, %73, %cst_23 [2] : vector<4x8x8xf32> to vector<4x8xf32>
    %75 = vector.shape_cast %74 : vector<4x8xf32> to vector<4x8x1xf32>
    %76 = vector.broadcast %75 : vector<4x8x1xf32> to vector<4x8x8xf32>
    %77 = arith.subf %73, %76 : vector<4x8x8xf32>
    %78 = math.exp %77 : vector<4x8x8xf32>
    %cst_24 = arith.constant dense<0.000000e+00> : vector<4x8xf32>
    %79 = vector.multi_reduction <add>, %78, %cst_24 [2] : vector<4x8x8xf32> to vector<4x8xf32>
    %80 = vector.shape_cast %79 : vector<4x8xf32> to vector<4x8x1xf32>
    %81 = tpu.reciprocal %80 {approx = true} : vector<4x8x1xf32> -> vector<4x8x1xf32>
    %82 = vector.broadcast %81 : vector<4x8x1xf32> to vector<4x8x8xf32>
    %83 = arith.mulf %78, %82 : vector<4x8x8xf32>
    %84 = arith.truncf %83 : vector<4x8x8xf32> to vector<4x8x8xbf16>
    "tpu.trace_start"() <{level = 10 : i32, message = "bts,bsd->btd"}> : () -> ()
    %cst_25 = arith.constant dense<0.000000e+00> : vector<4x8x8xf32>
    %85 = tpu.matmul %84, %69, %cst_25 {dimension_numbers = #tpu.dot_dimension_numbers<[2], [1], [1], [2], [0, 0, 0, 1, 1, 2], [0], [0]>} : vector<4x8x8xbf16>, vector<4x8x8xbf16>, vector<4x8x8xf32> -> vector<4x8x8xf32>
    "tpu.trace_stop"() : () -> ()
    %c0_26 = arith.constant 0 : index
    %c0_27 = arith.constant 0 : index
    %c8 = arith.constant 8 : index
    %86 = vector.load %arg14[%c0_26, %c0_27, %c8] : memref<4x8x32xf32, #tpu.memory_space<vmem>>, vector<4x8x8xf32>
    tpu.vector_store %arg14[%c0_26, %c0_27, %c8], %85 {strides = array<i32>} : memref<4x8x32xf32, #tpu.memory_space<vmem>>, vector<4x8x8xf32>,
    %87 = vector.extract_strided_slice %30 {offsets = [0, 0, 16], sizes = [4, 8, 8], strides = [1, 1, 1]} : vector<4x8x32xf32> to vector<4x8x8xf32>
    %88 = arith.truncf %87 : vector<4x8x8xf32> to vector<4x8x8xbf16>
    %89 = vector.extract_strided_slice %32 {offsets = [0, 0, 16], sizes = [4, 8, 8], strides = [1, 1, 1]} : vector<4x8x32xf32> to vector<4x8x8xf32>
    %90 = arith.truncf %89 : vector<4x8x8xf32> to vector<4x8x8xbf16>
    %91 = vector.extract_strided_slice %34 {offsets = [0, 0, 16], sizes = [4, 8, 8], strides = [1, 1, 1]} : vector<4x8x32xf32> to vector<4x8x8xf32>
    %92 = arith.truncf %91 : vector<4x8x8xf32> to vector<4x8x8xbf16>
    "tpu.trace_start"() <{level = 10 : i32, message = "btd,bsd->bts"}> : () -> ()
    %cst_28 = arith.constant dense<0.000000e+00> : vector<4x8x8xf32>
    %93 = tpu.matmul %88, %90, %cst_28 {dimension_numbers = #tpu.dot_dimension_numbers<[2], [2], [1], [1], [0, 0, 0, 1, 1, 1], [0], [0]>} : vector<4x8x8xbf16>, vector<4x8x8xbf16>, vector<4x8x8xf32> -> vector<4x8x8xf32>
    "tpu.trace_stop"() : () -> ()
    %94 = vector.shape_cast %40 : vector<8x8xf32> to vector<1x8x8xf32>
    %95 = vector.broadcast %94 : vector<1x8x8xf32> to vector<4x8x8xf32>
    %96 = arith.addf %93, %95 : vector<4x8x8xf32>
    %cst_29 = arith.constant dense<0xFF800000> : vector<4x8xf32>
    %97 = vector.multi_reduction <maximumf>, %96, %cst_29 [2] : vector<4x8x8xf32> to vector<4x8xf32>
    %98 = vector.shape_cast %97 : vector<4x8xf32> to vector<4x8x1xf32>
    %99 = vector.broadcast %98 : vector<4x8x1xf32> to vector<4x8x8xf32>
    %100 = arith.subf %96, %99 : vector<4x8x8xf32>
    %101 = math.exp %100 : vector<4x8x8xf32>
    %cst_30 = arith.constant dense<0.000000e+00> : vector<4x8xf32>
    %102 = vector.multi_reduction <add>, %101, %cst_30 [2] : vector<4x8x8xf32> to vector<4x8xf32>
    %103 = vector.shape_cast %102 : vector<4x8xf32> to vector<4x8x1xf32>
    %104 = tpu.reciprocal %103 {approx = true} : vector<4x8x1xf32> -> vector<4x8x1xf32>
    %105 = vector.broadcast %104 : vector<4x8x1xf32> to vector<4x8x8xf32>
    %106 = arith.mulf %101, %105 : vector<4x8x8xf32>
    %107 = arith.truncf %106 : vector<4x8x8xf32> to vector<4x8x8xbf16>
    "tpu.trace_start"() <{level = 10 : i32, message = "bts,bsd->btd"}> : () -> ()
    %cst_31 = arith.constant dense<0.000000e+00> : vector<4x8x8xf32>
    %108 = tpu.matmul %107, %92, %cst_31 {dimension_numbers = #tpu.dot_dimension_numbers<[2], [1], [1], [2], [0, 0, 0, 1, 1, 2], [0], [0]>} : vector<4x8x8xbf16>, vector<4x8x8xbf16>, vector<4x8x8xf32> -> vector<4x8x8xf32>
    "tpu.trace_stop"() : () -> ()
    %c0_32 = arith.constant 0 : index
    %c0_33 = arith.constant 0 : index
    %c16 = arith.constant 16 : index
    %109 = vector.load %arg14[%c0_32, %c0_33, %c16] : memref<4x8x32xf32, #tpu.memory_space<vmem>>, vector<4x8x8xf32>
    tpu.vector_store %arg14[%c0_32, %c0_33, %c16], %108 {strides = array<i32>} : memref<4x8x32xf32, #tpu.memory_space<vmem>>, vector<4x8x8xf32>,
    %110 = vector.extract_strided_slice %30 {offsets = [0, 0, 24], sizes = [4, 8, 8], strides = [1, 1, 1]} : vector<4x8x32xf32> to vector<4x8x8xf32>
    %111 = arith.truncf %110 : vector<4x8x8xf32> to vector<4x8x8xbf16>
    %112 = vector.extract_strided_slice %32 {offsets = [0, 0, 24], sizes = [4, 8, 8], strides = [1, 1, 1]} : vector<4x8x32xf32> to vector<4x8x8xf32>
    %113 = arith.truncf %112 : vector<4x8x8xf32> to vector<4x8x8xbf16>
    %114 = vector.extract_strided_slice %34 {offsets = [0, 0, 24], sizes = [4, 8, 8], strides = [1, 1, 1]} : vector<4x8x32xf32> to vector<4x8x8xf32>
    %115 = arith.truncf %114 : vector<4x8x8xf32> to vector<4x8x8xbf16>
    "tpu.trace_start"() <{level = 10 : i32, message = "btd,bsd->bts"}> : () -> ()
    %cst_34 = arith.constant dense<0.000000e+00> : vector<4x8x8xf32>
    %116 = tpu.matmul %111, %113, %cst_34 {dimension_numbers = #tpu.dot_dimension_numbers<[2], [2], [1], [1], [0, 0, 0, 1, 1, 1], [0], [0]>} : vector<4x8x8xbf16>, vector<4x8x8xbf16>, vector<4x8x8xf32> -> vector<4x8x8xf32>
    "tpu.trace_stop"() : () -> ()
    %117 = vector.shape_cast %40 : vector<8x8xf32> to vector<1x8x8xf32>
    %118 = vector.broadcast %117 : vector<1x8x8xf32> to vector<4x8x8xf32>
    %119 = arith.addf %116, %118 : vector<4x8x8xf32>
    %cst_35 = arith.constant dense<0xFF800000> : vector<4x8xf32>
    %120 = vector.multi_reduction <maximumf>, %119, %cst_35 [2] : vector<4x8x8xf32> to vector<4x8xf32>
    %121 = vector.shape_cast %120 : vector<4x8xf32> to vector<4x8x1xf32>
    %122 = vector.broadcast %121 : vector<4x8x1xf32> to vector<4x8x8xf32>
    %123 = arith.subf %119, %122 : vector<4x8x8xf32>
    %124 = math.exp %123 : vector<4x8x8xf32>
    %cst_36 = arith.constant dense<0.000000e+00> : vector<4x8xf32>
    %125 = vector.multi_reduction <add>, %124, %cst_36 [2] : vector<4x8x8xf32> to vector<4x8xf32>
    %126 = vector.shape_cast %125 : vector<4x8xf32> to vector<4x8x1xf32>
    %127 = tpu.reciprocal %126 {approx = true} : vector<4x8x1xf32> -> vector<4x8x1xf32>
    %128 = vector.broadcast %127 : vector<4x8x1xf32> to vector<4x8x8xf32>
    %129 = arith.mulf %124, %128 : vector<4x8x8xf32>
    %130 = arith.truncf %129 : vector<4x8x8xf32> to vector<4x8x8xbf16>
    "tpu.trace_start"() <{level = 10 : i32, message = "bts,bsd->btd"}> : () -> ()
    %cst_37 = arith.constant dense<0.000000e+00> : vector<4x8x8xf32>
    %131 = tpu.matmul %130, %115, %cst_37 {dimension_numbers = #tpu.dot_dimension_numbers<[2], [1], [1], [2], [0, 0, 0, 1, 1, 2], [0], [0]>} : vector<4x8x8xbf16>, vector<4x8x8xbf16>, vector<4x8x8xf32> -> vector<4x8x8xf32>
    "tpu.trace_stop"() : () -> ()
    %c0_38 = arith.constant 0 : index
    %c0_39 = arith.constant 0 : index
    %c24 = arith.constant 24 : index
    %132 = vector.load %arg14[%c0_38, %c0_39, %c24] : memref<4x8x32xf32, #tpu.memory_space<vmem>>, vector<4x8x8xf32>
    tpu.vector_store %arg14[%c0_38, %c0_39, %c24], %131 {strides = array<i32>} : memref<4x8x32xf32, #tpu.memory_space<vmem>>, vector<4x8x8xf32>,
    %c0_40 = arith.constant 0 : index
    %c0_41 = arith.constant 0 : index
    %c0_42 = arith.constant 0 : index
    %133 = vector.load %arg14[%c0_40, %c0_41, %c0_42] : memref<4x8x32xf32, #tpu.memory_space<vmem>>, vector<4x8x32xf32>
    %134 = vector.shape_cast %133 : vector<4x8x32xf32> to vector<32x32xf32>
    %135 = arith.truncf %134 : vector<32x32xf32> to vector<32x32xbf16>
    %c0_43 = arith.constant 0 : index
    %c0_44 = arith.constant 0 : index
    %136 = vector.load %arg5[%c0_43, %c0_44] : memref<32x32xbf16, #tpu.memory_space<vmem>>, vector<32x32xbf16>
    %cst_45 = arith.constant dense<0.000000e+00> : vector<32x32xf32>
    %137 = tpu.matmul %135, %136, %cst_45 {dimension_numbers = #tpu.dot_dimension_numbers<[1], [0], [0], [1], [0, 0, 1, 1], [], []>} : vector<32x32xbf16>, vector<32x32xbf16>, vector<32x32xf32> -> vector<32x32xf32>
    %c0_46 = arith.constant 0 : index
    %c0_47 = arith.constant 0 : index
    %138 = vector.load %arg6[%c0_46, %c0_47] : memref<1x32xf32, #tpu.memory_space<vmem>>, vector<1x32xf32>
    %139 = vector.broadcast %138 : vector<1x32xf32> to vector<32x32xf32>
    %140 = arith.addf %137, %139 : vector<32x32xf32>
    %141 = arith.addf %1, %140 : vector<32x32xf32>
    %c0_48 = arith.constant 0 : index
    %c0_49 = arith.constant 0 : index
    %142 = vector.load %arg7[%c0_48, %c0_49] : memref<1x32xf32, #tpu.memory_space<vmem>>, vector<1x32xf32>
    %c0_50 = arith.constant 0 : index
    %c0_51 = arith.constant 0 : index
    %143 = vector.load %arg8[%c0_50, %c0_51] : memref<1x32xf32, #tpu.memory_space<vmem>>, vector<1x32xf32>
    %cst_52 = arith.constant dense<0.000000e+00> : vector<32xf32>
    %144 = vector.multi_reduction <add>, %141, %cst_52 [1] : vector<32x32xf32> to vector<32xf32>
    %145 = vector.shape_cast %144 : vector<32xf32> to vector<32x1xf32>
    %cst_53 = arith.constant 3.200000e+01 : f32
    %146 = vector.broadcast %cst_53 : f32 to vector<32x1xf32>
    %147 = arith.divf %145, %146 : vector<32x1xf32>
    %148 = vector.broadcast %147 : vector<32x1xf32> to vector<32x32xf32>
    %149 = arith.subf %141, %148 : vector<32x32xf32>
    %150 = arith.mulf %149, %149 : vector<32x32xf32>
    %cst_54 = arith.constant dense<0.000000e+00> : vector<32xf32>
    %151 = vector.multi_reduction <add>, %150, %cst_54 [1] : vector<32x32xf32> to vector<32xf32>
    %152 = vector.shape_cast %151 : vector<32xf32> to vector<32x1xf32>
    %cst_55 = arith.constant 3.200000e+01 : f32
    %153 = vector.broadcast %cst_55 : f32 to vector<32x1xf32>
    %154 = arith.divf %152, %153 : vector<32x1xf32>
    %155 = vector.broadcast %147 : vector<32x1xf32> to vector<32x32xf32>
    %156 = arith.subf %141, %155 : vector<32x32xf32>
    %cst_56 = arith.constant 9.99999974E-6 : f32
    %157 = vector.broadcast %cst_56 : f32 to vector<32x1xf32>
    %158 = arith.addf %154, %157 : vector<32x1xf32>
    %159 = math.rsqrt %158 : vector<32x1xf32>
    %160 = vector.broadcast %159 : vector<32x1xf32> to vector<32x32xf32>
    %161 = arith.mulf %156, %160 : vector<32x32xf32>
    %162 = vector.broadcast %142 : vector<1x32xf32> to vector<32x32xf32>
    %163 = arith.mulf %161, %162 : vector<32x32xf32>
    %164 = vector.broadcast %143 : vector<1x32xf32> to vector<32x32xf32>
    %165 = arith.addf %163, %164 : vector<32x32xf32>
    %166 = arith.truncf %165 : vector<32x32xf32> to vector<32x32xbf16>
    %cst_57 = arith.constant 0.000000e+00 : f32
    %167 = vector.broadcast %cst_57 : f32 to vector<32x32xf32>
    %c0_58 = arith.constant 0 : index
    %c0_59 = arith.constant 0 : index
    %168 = vector.load %arg9[%c0_58, %c0_59] : memref<32x128xbf16, #tpu.memory_space<vmem>>, vector<32x128xbf16>
    %cst_60 = arith.constant dense<0.000000e+00> : vector<32x128xf32>
    %169 = tpu.matmul %166, %168, %cst_60 {dimension_numbers = #tpu.dot_dimension_numbers<[1], [0], [0], [1], [0, 0, 1, 1], [], []>} : vector<32x32xbf16>, vector<32x128xbf16>, vector<32x128xf32> -> vector<32x128xf32>
    %c0_61 = arith.constant 0 : index
    %c0_62 = arith.constant 0 : index
    %170 = vector.load %arg10[%c0_61, %c0_62] : memref<1x128xf32, #tpu.memory_space<vmem>>, vector<1x128xf32>
    %171 = vector.broadcast %170 : vector<1x128xf32> to vector<32x128xf32>
    %172 = arith.addf %169, %171 : vector<32x128xf32>
    %cst_63 = arith.constant 0.000000e+00 : f32
    %173 = vector.broadcast %cst_63 : f32 to vector<32x128xf32>
    %174 = arith.maximumf %172, %173 : vector<32x128xf32>
    %175 = arith.truncf %174 : vector<32x128xf32> to vector<32x128xbf16>
    %c0_64 = arith.constant 0 : index
    %c0_65 = arith.constant 0 : index
    %176 = vector.load %arg11[%c0_64, %c0_65] : memref<128x32xbf16, #tpu.memory_space<vmem>>, vector<128x32xbf16>
    %cst_66 = arith.constant dense<0.000000e+00> : vector<32x32xf32>
    %177 = tpu.matmul %175, %176, %cst_66 {dimension_numbers = #tpu.dot_dimension_numbers<[1], [0], [0], [1], [0, 0, 1, 1], [], []>} : vector<32x128xbf16>, vector<128x32xbf16>, vector<32x32xf32> -> vector<32x32xf32>
    %178 = arith.addf %167, %177 : vector<32x32xf32>
    %179 = arith.addf %141, %178 : vector<32x32xf32>
    %c0_67 = arith.constant 0 : index
    %c0_68 = arith.constant 0 : index
    %180 = vector.load %arg12[%c0_67, %c0_68] : memref<1x32xf32, #tpu.memory_space<vmem>>, vector<1x32xf32>
    %181 = vector.broadcast %180 : vector<1x32xf32> to vector<32x32xf32>
    %182 = arith.addf %179, %181 : vector<32x32xf32>
    %183 = vector.shape_cast %182 : vector<32x32xf32> to vector<4x8x32xf32>
    %c0_69 = arith.constant 0 : index
    %c0_70 = arith.constant 0 : index
    %c0_71 = arith.constant 0 : index
    %184 = vector.load %arg13[%c0_69, %c0_70, %c0_71] : memref<4x8x32xf32, #tpu.memory_space<vmem>>, vector<4x8x32xf32>
    tpu.vector_store %arg13[%c0_69, %c0_70, %c0_71], %183 {strides = array<i32>} : memref<4x8x32xf32, #tpu.memory_space<vmem>>, vector<4x8x32xf32>,
    return
  }
  func.func @transform_0(%arg0: i32) -> (i32, i32, i32) {
    %c0_i32 = arith.constant 0 : i32
    %c0_i32_0 = arith.constant 0 : i32
    %c0_i32_1 = arith.constant 0 : i32
    return %arg0, %c0_i32, %c0_i32_0 : i32, i32, i32
  }
  func.func @transform_1(%arg0: i32) -> (i32, i32) {
    %c0_i32 = arith.constant 0 : i32
    %c0_i32_0 = arith.constant 0 : i32
    %c0_i32_1 = arith.constant 0 : i32
    return %c0_i32, %c0_i32_0 : i32, i32
  }
  func.func @transform_2(%arg0: i32) -> (i32, i32) {
    %c0_i32 = arith.constant 0 : i32
    %c0_i32_0 = arith.constant 0 : i32
    %c0_i32_1 = arith.constant 0 : i32
    return %c0_i32, %c0_i32_0 : i32, i32
  }
  func.func @transform_3(%arg0: i32) -> (i32, i32) {
    %c0_i32 = arith.constant 0 : i32
    %c0_i32_0 = arith.constant 0 : i32
    %c0_i32_1 = arith.constant 0 : i32
    return %c0_i32, %c0_i32_0 : i32, i32
  }
  func.func @transform_4(%arg0: i32) -> (i32, i32) {
    %c0_i32 = arith.constant 0 : i32
    %c0_i32_0 = arith.constant 0 : i32
    %c0_i32_1 = arith.constant 0 : i32
    return %c0_i32, %c0_i32_0 : i32, i32
  }
  func.func @transform_5(%arg0: i32) -> (i32, i32) {
    %c0_i32 = arith.constant 0 : i32
    %c0_i32_0 = arith.constant 0 : i32
    %c0_i32_1 = arith.constant 0 : i32
    return %c0_i32, %c0_i32_0 : i32, i32
  }
  func.func @transform_6(%arg0: i32) -> (i32, i32) {
    %c0_i32 = arith.constant 0 : i32
    %c0_i32_0 = arith.constant 0 : i32
    %c0_i32_1 = arith.constant 0 : i32
    return %c0_i32, %c0_i32_0 : i32, i32
  }
  func.func @transform_7(%arg0: i32) -> (i32, i32) {
    %c0_i32 = arith.constant 0 : i32
    %c0_i32_0 = arith.constant 0 : i32
    %c0_i32_1 = arith.constant 0 : i32
    return %c0_i32, %c0_i32_0 : i32, i32
  }
  func.func @transform_8(%arg0: i32) -> (i32, i32) {
    %c0_i32 = arith.constant 0 : i32
    %c0_i32_0 = arith.constant 0 : i32
    %c0_i32_1 = arith.constant 0 : i32
    return %c0_i32, %c0_i32_0 : i32, i32
  }
  func.func @transform_9(%arg0: i32) -> (i32, i32) {
    %c0_i32 = arith.constant 0 : i32
    %c0_i32_0 = arith.constant 0 : i32
    %c0_i32_1 = arith.constant 0 : i32
    return %c0_i32, %c0_i32_0 : i32, i32
  }
  func.func @transform_10(%arg0: i32) -> (i32, i32) {
    %c0_i32 = arith.constant 0 : i32
    %c0_i32_0 = arith.constant 0 : i32
    %c0_i32_1 = arith.constant 0 : i32
    return %c0_i32, %c0_i32_0 : i32, i32
  }
  func.func @transform_11(%arg0: i32) -> (i32, i32) {
    %c0_i32 = arith.constant 0 : i32
    %c0_i32_0 = arith.constant 0 : i32
    %c0_i32_1 = arith.constant 0 : i32
    return %c0_i32, %c0_i32_0 : i32, i32
  }
  func.func @transform_12(%arg0: i32) -> (i32, i32, i32) {
    %c0_i32 = arith.constant 0 : i32
    %c0_i32_0 = arith.constant 0 : i32
    %c0_i32_1 = arith.constant 0 : i32
    return %arg0, %c0_i32, %c0_i32_0 : i32, i32, i32
  }
}

</mosaic_0001>

<bundles_post_ra>
// kernel: tpu_custom_call.1
= control target key start
LH: loop header
LB: loop body
LE: loop exit
PB: predicated region body
PF: predicated region fallthrough
CT: control target
= control target key end

     0   :  { %17 = vsyncpa [#allocation4], 0  ;;  %s4303_s0 = inlined_call_operand.vmem [shape: f32[8,8,32], index: 0, kind: input, shape index: {}]   ;;  %s4304_s1 = inlined_call_operand.vmem [shape: f32[1,32], index: 1, kind: input, shape index: {}]   ;;  %s4305_s2 = inlined_call_operand.vmem [shape: f32[1,32], index: 2, kind: input, shape index: {}]   ;;  %s4306_s3 = inlined_call_operand.vmem [shape: bf16[32,96], index: 3, kind: input, shape index: {}]   ;;  %s4307_s4 = inlined_call_operand.hbm [shape: bf16[32,32], index: 4, kind: input, shape index: {}]   ;;  %s4308_s5 = inlined_call_operand.vmem [shape: f32[1,32], index: 5, kind: input, shape index: {}]   ;;  %s4309_s6 = inlined_call_operand.vmem [shape: f32[1,32], index: 6, kind: input, shape index: {}]   ;;  %s4310_s7 = inlined_call_operand.vmem [shape: f32[1,32], index: 7, kind: input, shape index: {}]   ;;  %s4311_s8 = inlined_call_operand.hbm [shape: bf16[32,128], index: 8, kind: input, shape index: {}]   ;;  %s4312_s9 = inlined_call_operand.vmem [shape: f32[1,128], index: 9, kind: input, shape index: {}]   ;;  %s4313_s10 = inlined_call_operand.vmem [shape: bf16[128,32], index: 10, kind: input, shape index: {}]   ;;  %s4314_s11 = inlined_call_operand.vmem [shape: f32[1,32], index: 11, kind: input, shape index: {}]   ;;  %s4315_s12 = inlined_call_operand.hbm [shape: f32[8,8,32], index: 12, kind: output, shape index: {}]  }
   0x1   :  { %18 = vsyncpa [#allocation7], 0 }
   0x2   :  { %19 = vsyncpa [#allocation5], 0 }
   0x3   :  { %21 = vsyncpa [#allocation5 + $0x1], 0  ;;  %s3704_s21 = smov 0   ;;  %s3706_s22 = smov 0  }
   0x4   :  { %s3708_s23 = smov 0   ;;  %s3710_s24 = smov 0  }
   0x5 LB: > { %4325 = sst [smem:[#allocation12_spill]] %s3602_s21  ;;  %s3725_s25 = sadd.s32 4294967295, %s3614_s24   ;;  %s3614_s24 = sphi %s3710_s24, %s4345_s24   ;;  %s3610_s23 = sphi %s3708_s23, %s4347_s23   ;;  %s3606_s22 = sphi %s3706_s22, %s4349_s22   ;;  %s3602_s21 = sphi %s3704_s21, %s4348_s21  }
   0x6   : > { %4326 = sst [smem:[#allocation13_spill]] %s3610_s23  ;;  %s2912_s26 = sadd.s32 4294967294, %s3614_s24  }
   0x7   : > { %4327 = sst [smem:[#allocation14_spill]] %s3614_s24  ;;  %s3729_s27 = sadd.s32 1, %s3614_s24  }
   0x8   : > { %4328 = sst [smem:[#allocation15_spill]] %s3729_s27  ;;  %s291_s28 = sadd.s32 1, %s3610_s23 }
   0x9   : > { %s288_s29 = ssub.s32 %s3614_s24, %s3729_s27  ;;  %p301_p0 = scmp.ne.s32.totalorder %s3610_s23, %s3606_s22 }
   0xa   : > { %p289_p1 = scmp.eq.s32.totalorder %s288_s29, 0  ;;  %p302_p2 = scmp.eq.s32.totalorder %s3725_s25, 1 }
   0xb   : > { %p307_p3 = scmp.ne.s32.totalorder %s3606_s22, %s3602_s21  ;;  %p308_p4 = scmp.eq.s32.totalorder %s2912_s26, 1 }
   0xc   : > { %s3740_s30 = scalar_select %p289_p1, %s3610_s23, %s291_s28  }
   0xd   : > { %p3742_p5 = por %p302_p2, %p301_p0  ;;  %p3746_p6 = por %p308_p4, %p307_p3 }
   0xe   : > { %4329 = sst [smem:[#allocation16_spill]] %s3740_s30  ;;  %p2913_p7 = scmp.ge.s32.totalorder %s3614_s24, 1 }
   0xf   : > { %s4330_s13 = scalar_select %p3742_p5, 1, 0 }
  0x10   : > { %s4331_s14 = scalar_select %p3746_p6, 1, 0 }
  0x11   : > { %p315_p8 = scmp.lt.s32.totalorder %s3614_s24, 3  ;;  %p4319_p9 = scmp.eq.s32.totalorder %s3725_s25, 0 }
  0x12   : > { %4332 = sst [smem:[#allocation17_spill]] %s4331_s14  ;;  %s3616_s16 = smov [#allocation3]  }
  0x13   : > { %p3753_p10 = pnand %p2913_p7, %p315_p8  ;;  %s336_s17 = sshll.u32 %s3616_s16, 4  ;;  %s337_s17 = int_to_ptr.vmem [resolvable:$true] %s336_s17 }
  0x14   : > { %s3617_s19 = smov [#allocation6]   ;;  %s3488_s29 = scalar_lea.hbm %s4307_s4, 256 }
  0x15   : > { %s4333_s15 = scalar_select %p3753_p10, 1, 0 }
  0x16   : > { %p3320_p11 = pneg %p3753_p10  ;;  %s358_s20 = sshll.u32 %s3617_s19, 4  ;;  %s3765_s20 = int_to_ptr.vmem [resolvable:$true] %s358_s20 }
  0x17   : > { %p3489_p13 = scmp.ne.s32.totalorder %s4307_s4, %s3488_s29  ;;  %p3495_p3 = scmp.lt.u32.totalorder %s3488_s29, %s4307_s4 }
  0x18   : > { %p3761_p12 = pnand %p4319_p9, %p3320_p11 }
  0x1a   : > { %p3490_p0 = pneg %p3761_p12 }
  0x1c   : > { %p3491_p1 = pnand %p3490_p0, %p3489_p13 }
  0x1e   : > { %p3492_p2 = pneg %p3491_p1 }
  0x20   : > { %p3497_p4 = pnand %p3495_p3, %p3492_p2 }
  0x22   : > { %3500 = shalt.err (!%p3497_p4)
}
  0x23   : > { %s3501_s19 = scalar_lea.vmem %s337_s17, 256  ;;  %p3509_p9 = scmp.lt.s32.totalorder %s337_s17, %s337_s17 }
  0x24   : > { %p3502_p7 = scmp.ne.s32.totalorder %s337_s17, %s3501_s19  ;;  %p3510_p6 = scmp.lt.s32.totalorder %s3501_s19, %s3501_s19 }
  0x26   : > { %p3504_p8 = pnand %p3502_p7, %p3490_p0  ;;  %p3511_p5 = por %p3510_p6, %p3509_p9 }
  0x28   : > { %p3505_p11 = pneg %p3504_p8 }
  0x2a   : > { %p3512_p10 = pnand %p3511_p5, %p3505_p11 }
  0x2c   : > { %3515 = shalt.err (!%p3512_p10)
}
  0x2d   : > { %s3618_s30 = smov 64   ;;  %s3619_s26 = smov 4  }
  0x2e   : > { %3323 = dma.hbm_to_vmem [thread:$0]  (!%p3761_p12), %s4307_s4, 256, %s337_s17, [#allocation4], %s3618_s30, %s3618_s30, %s3619_s26  }
  0x2f   : > { %s3516_s16 = scalar_lea.hbm %s4311_s8, 256 }
  0x30   : > { %p3517_p13 = scmp.ne.s32.totalorder %s4311_s8, %s3516_s16  ;;  %p3523_p9 = scmp.lt.u32.totalorder %s3516_s16, %s4311_s8 }
  0x32   : > { %p3519_p5 = pnand %p3517_p13, %p3490_p0 }
  0x34   : > { %p3520_p6 = pneg %p3519_p5 }
  0x36   : > { %p3525_p10 = pnand %p3523_p9, %p3520_p6 }
  0x38   : > { %3528 = shalt.err (!%p3525_p10)
}
  0x39   : > { %s3529_s17 = scalar_lea.vmem %s3765_s20, 256  ;;  %p3537_p4 = scmp.lt.s32.totalorder %s3765_s20, %s3765_s20 }
  0x3a   : > { %p3530_p1 = scmp.ne.s32.totalorder %s3765_s20, %s3529_s17  ;;  %p3538_p7 = scmp.lt.s32.totalorder %s3529_s17, %s3529_s17 }
  0x3c   : > { %p3532_p2 = pnand %p3530_p1, %p3490_p0  ;;  %p3539_p8 = por %p3538_p7, %p3537_p4 }
  0x3e   : > { %p3533_p3 = pneg %p3532_p2 }
  0x40   : > { %p3540_p11 = pnand %p3539_p8, %p3533_p3 }
  0x42   : > { %3543 = shalt.err (!%p3540_p11)
}
  0x43   : > { %3326 = dma.hbm_to_vmem [thread:$0]  (!%p3761_p12), %s4311_s8, 256, %s3765_s20, [#allocation7], %s3618_s30, %s3618_s30, %s3619_s26  }
  0x44   : > { %p4335_p13 = scmp.ne.s32.totalorder %s4333_s15, 0 }
  0x45   : > { %p4336_p5 = scmp.eq.s32.totalorder (!%p4335_p13), %s3725_s25, 0 }
  0x46   : > { %392 = sbr.rel (%p4335_p13) target bundleno = 4451 (0x1163), region = 68 }
  0x4d   : > { %3589 = dma.done.wait (%p4336_p5), [#allocation4], 256   ;;  %p4337_p0 = pmov %p4336_p5 }
  0x4f   : > { %3591 = vsyncadd (%p4337_p0), [#allocation4], 4294967040  ;;  %p4338_p6 = pmov %p4337_p0 }
  0x50   : > { %p4339_p9 = pmov %p4337_p0 }
  0x51   : > { %3593 = dma.done.wait (%p4338_p6), [#allocation7], 256  }
  0x52   : > { %3595 = vsyncadd (%p4339_p9), [#allocation7], 4294967040  ;;  %s2921_s14 = sshll.u32 %s3725_s25, 2  ;;  %vm452_vm0 = vcmask 261120   ;;  %v3390_v28 = vld [vmem:[%s4306_s3] sm:$0xff]   ;;  %v3391_v29 = vld [vmem:[%s4306_s3 + $0x8] sm:$0xff]  }
  0x53   : > { %p439_p10 = scmp.lt.s32.totalorder %s2921_s14, 7  ;;  %3074 = vmatprep.subr.bf16.mxu0 %v3390_v28  ;;  %v2923_v44 = vld [vmem:[%s4304_s1] ss:$0 sm:$0xff]  ;;  %v3620_v62 = vmov 0.0   ;;  %vm3621_vm1 = vmmov 0   ;;  %s3622_s21 = smov 96  }
  0x54   : > { %3075 = vmatpush3.bf16.msra.mxu0 %v3390_v28  ;;  %v2924_v50 = vld [vmem:[%s4305_s2] ss:$0 sm:$0xff]  ;;  %3094 = vmatprep.subr.bf16.mxu1 %v3620_v62  ;;  %vm612_vm2 = vcmask 64512   ;;  %s3624_s24 = smov 64   ;;  %vm859_vm4 = vcmask 1043456   ;;  %s3627_s15 = smov 56  }
  0x55   : > { %s4351_s14 = smov (!%p439_p10, %s2921_s14), 7  ;;  %3076 = vmatprep.subr.bf16.mxu0 %v3391_v29  ;;  %3096 = vmatprep.mubr.msk.bf16.mxu1 %vm3621_vm1, %v3620_v62  ;;  %s3628_s20 = smov 80   ;;  %vm1507_vm5 = vcmask 130112   ;;  %vm1968_vm6 = vcmask 195712   ;;  %vm2429_vm7 = vcmask 261312  }
  0x56   : > { %s2922_s18 = sshll.u32 %s4351_s14, 3  ;;  %s3625_s14 = smov 88  }
  0x57   : > { %s3828_s30 = scalar_lea.vmem %s4303_s0, %s2922_s18  ;;  %s3626_s18 = smov 120  }
  0x58   : > { %v446_v0 = vld [vmem:[%s3828_s30] sm:$0xff]  ;;  %v448_v1 = vld [vmem:[%s3828_s30 + $0x10] sm:$0xff]  ;;  %v447_v2 = vld [vmem:[%s3828_s30 + $0x8] sm:$0xff]  ;;  %3077 = vmatpush3.bf16.msra.mxu0 %v3391_v29  ;;  %s3629_s26 = smov 112   ;;  %s3630_s23 = smov 48  }
  0x59   : > { %v453_v3 = vsel %vm452_vm0, %v446_v0, 0.0  ;;  %v459_v4 = vsel %vm452_vm0, %v448_v1, 0.0  ;;  %v449_v5 = vld [vmem:[%s3828_s30 + $0x18] sm:$0xff]  ;;  %v456_v6 = vsel %vm452_vm0, %v447_v2, 0.0  ;;  %3082 = vmatprep.subr.bf16.mxu0 %v3620_v62  ;;  %s3631_s27 = smov 72   ;;  %s3632_s28 = smov 104  }
  0x5a   : > { %454 = vadd.xlane.f32.xlu0 %v453_v3  ;;  %460 = vadd.xlane.f32.xlu1 %v459_v4  ;;  %v462_v7 = vsel %vm452_vm0, %v449_v5, 0.0  ;;  %s3633_s29 = smov 40   ;;  %s3634_s16 = smov 8  }
  0x5b   : > { %s3635_s19 = smov 16   ;;  %s3636_s17 = smov 24  }
  0x5c   : > { %p4340_p1 = scmp.ne.s32.totalorder %s4330_s13, 0 }
  0x5e   : > { %457 = vadd.xlane.f32.xlu0 %v456_v6  ;;  %463 = vadd.xlane.f32.xlu1 %v462_v7 }
  0xe7   : > { %v455_v8 = vpop.xlane.xlu0 %454  ;;  %v461_v9 = vpop.xlane.xlu1 %460 }
  0xe8   : > { %v466_v10 = vmul.f32 0.03125, %v455_v8  ;;  %v468_v11 = vmul.f32 0.03125, %v461_v9 }
  0xea   : > { %v470_v12 = vsub.f32 %v446_v0, %v466_v10  ;;  %v472_v13 = vsub.f32 %v448_v1, %v468_v11 }
  0xeb   : > { %v458_v14 = vpop.xlane.xlu0 %457  ;;  %v464_v15 = vpop.xlane.xlu1 %463 }
  0xec   : > { %v467_v16 = vmul.f32 0.03125, %v458_v14  ;;  %v469_v17 = vmul.f32 0.03125, %v464_v15  ;;  %v474_v18 = vmul.f32 %v470_v12, %v470_v12  ;;  %v476_v19 = vmul.f32 %v472_v13, %v472_v13 }
  0xed   : > { %v599_v15 = vlaneseq }
  0xee   : > { %v471_v20 = vsub.f32 %v447_v2, %v467_v16  ;;  %v473_v21 = vsub.f32 %v449_v5, %v469_v17  ;;  %v478_v22 = vsel %vm452_vm0, %v474_v18, 0.0  ;;  %v484_v23 = vsel %vm452_vm0, %v476_v19, 0.0 }
  0xef   : > { %479 = vadd.xlane.f32.xlu0 %v478_v22  ;;  %v600_v16 = vshrl.u32 %v599_v15, 7  ;;  %v602_v17 = vand.u32 127, %v599_v15  ;;  %v3623_v18 = vmov -1e+30  }
  0xf0   : > { %v475_v24 = vmul.f32 %v471_v20, %v471_v20  ;;  %v477_v25 = vmul.f32 %v473_v21, %v473_v21 }
  0xf1   : > { %vm603_vm3 = vcmp.ge.s32.totalorder %v600_v16, %v602_v17 }
  0xf2   : > { %v481_v26 = vsel %vm452_vm0, %v475_v24, 0.0  ;;  %v487_v27 = vsel %vm452_vm0, %v477_v25, 0.0  ;;  %v3898_v19 = vsel %vm603_vm3, 0.0, %v3623_v18 }
  0xf3   : > { %485 = vadd.xlane.f32.xlu0 %v484_v23  ;;  %482 = vadd.xlane.f32.xlu1 %v481_v26 }
  0xf7   : > { %488 = vadd.xlane.f32.xlu1 %v487_v27 }
 0x17c   : > { %v480_v30 = vpop.xlane.xlu0 %479 }
 0x17d   : > { %v490_v31 = vmul.f32 0.03125, %v480_v30 }
 0x17f   : > { %v494_v32 = vadd.f32 1e-05, %v490_v31 }
 0x180   : > { %v483_v33 = vpop.xlane.xlu1 %482  ;;  %v486_v34 = vpop.xlane.xlu0 %485 }
 0x181   : > { %3404 = vrsqrt.f32 %v494_v32  ;;  %v491_v35 = vmul.f32 0.03125, %v483_v33  ;;  %v492_v36 = vmul.f32 0.03125, %v486_v34 }
 0x183   : > { %v495_v37 = vadd.f32 1e-05, %v491_v35  ;;  %v496_v38 = vadd.f32 1e-05, %v492_v36 }
 0x184   : > { %v489_v39 = vpop.xlane.xlu1 %488 }
 0x185   : > { %3406 = vrsqrt.f32 %v495_v37  ;;  %v493_v40 = vmul.f32 0.03125, %v489_v39 }
 0x186   : > { %3408 = vrsqrt.f32 %v496_v38 }
 0x187   : > { %v497_v41 = vadd.f32 1e-05, %v493_v40 }
 0x189   : > { %3410 = vrsqrt.f32 %v497_v41 }
 0x18b   : > { %v3405_v42 = vpop.eup %3404 }
 0x18c   : > { %v502_v43 = vmul.f32 %v3405_v42, %v470_v12 }
 0x18e   : > { %v512_v48 = vmul.f32 %v2923_v44, %v502_v43 }
 0x18f   : > { %v3407_v45 = vpop.eup %3406 }
 0x190   : > { %v3409_v46 = vpop.eup %3408  ;;  %v503_v47 = vmul.f32 %v3407_v45, %v471_v20  ;;  %v522_v54 = vadd.f32 %v2924_v50, %v512_v48 }
 0x191   : > { %v504_v49 = vmul.f32 %v3409_v46, %v472_v13 }
 0x192   : > { %v513_v51 = vmul.f32 %v2923_v44, %v503_v47 }
 0x193   : > { %v3411_v52 = vpop.eup %3410  ;;  %v514_v56 = vmul.f32 %v2923_v44, %v504_v49 }
 0x194   : > { %v505_v53 = vmul.f32 %v3411_v52, %v473_v21  ;;  %v523_v55 = vadd.f32 %v2924_v50, %v513_v51 }
 0x195   : > { %v524_v59 = vadd.f32 %v2924_v50, %v514_v56 }
 0x196   : > { %v526_v57 = vpack.c.bf16 %v523_v55, %v522_v54  ;;  %v515_v58 = vmul.f32 %v2923_v44, %v505_v53 }
 0x198   : > { %3078 = vmatprep.mubr.msk.bf16.mxu0 %vm452_vm0, %v526_v57  ;;  %v525_v60 = vadd.f32 %v2924_v50, %v515_v58 }
 0x19a   : > { %v527_v61 = vpack.c.bf16 %v525_v60, %v524_v59 }
 0x19c   : > { %3079 = vmatmul.mubr.msk.bf16.vlgmr.msra.gmra.mrb[0].mxu0 %vm452_vm0, %v527_v61 }
 0x19d   : > { %3084 = vmatprep.mubr.msk.bf16.mxu0 %vm3621_vm1, %v3620_v62 }
 0x26f   : > { %v3080_v63 = vpop.f32.mrb[0].mxu0 }
 0x270   : > { %v584_v0 = vpop.f32.mrb[1].mxu0  ;;  %v3868_v5 = vpack.c.bf16 %v3080_v63, %v3080_v63 }
 0x271   : > { %v3862_v1 = vpack.c.bf16 %v584_v0, %v584_v0  ;;  %v3081_v2 = vpop.f32.mrb[2].mxu0 }
 0x272   : > { %v587_v3 = vpop.f32.mrb[3].mxu0  ;;  %v3871_v6 = vpack.c.bf16 %v3081_v2, %v3081_v2 }
 0x273   : > { %v3864_v4 = vpack.c.bf16 %v587_v3, %v587_v3  ;;  %610 = vrot.lane.b32.xlu0 %v3862_v1, %s3622_s21 }
 0x275   : > { %660 = vrot.lane.b32.xlu1 %v3864_v4, %s3622_s21 }
 0x279   : > { %709 = vrot.lane.b32.xlu1 %v3868_v5, %s3622_s21 }
 0x27d   : > { %758 = vrot.lane.b32.xlu1 %v3871_v6, %s3622_s21 }
 0x2e5   : > { %v611_v7 = vpop.permute.xlu0 %610 }
 0x2e6   : > { %v617_v8 = vsel %vm612_vm2, %v611_v7, 0 }
 0x2e7   : > { %3083 = vmatpush3.bf16.xpose.msra.mxu0 %v617_v8  ;;  %v661_v9 = vpop.permute.xlu1 %660 }
 0x2e8   : > { %3088 = vmatprep.subr.bf16.mxu0 %v3620_v62  ;;  %v666_v12 = vsel %vm612_vm2, %v661_v9, 0 }
 0x2eb   : > { %v710_v10 = vpop.permute.xlu1 %709 }
 0x2ec   : > { %v715_v11 = vsel %vm612_vm2, %v710_v10, 0 }
 0x2ed   : > { %3095 = vmatpush3.bf16.xpose.msra.mxu1 %v715_v11 }
 0x2ee   : > { %3085 = vmatmul.mubr.msk.bf16.vlgmr.msra.gmra.mrb[4].mxu0 %vm612_vm2, %v3862_v1  ;;  %3106 = vmatprep.subr.bf16.mxu1 %v3620_v62 }
 0x2ef   : > { %3089 = vmatpush3.bf16.xpose.msra.mxu0 %v666_v12  ;;  %3090 = vmatprep.mubr.msk.bf16.mxu0 %vm3621_vm1, %v3620_v62  ;;  %v759_v13 = vpop.permute.xlu1 %758 }
 0x2f0   : > { %3100 = vmatprep.subr.bf16.mxu0 %v3620_v62  ;;  %v764_v14 = vsel %vm612_vm2, %v759_v13, 0 }
 0x2f4   : > { %3097 = vmatmul.mubr.msk.bf16.vlgmr.msra.gmra.mrb[0].mxu1 %vm612_vm2, %v3868_v5 }
 0x2f5   : > { %3108 = vmatprep.mubr.msk.bf16.mxu1 %vm3621_vm1, %v3620_v62 }
 0x2f6   : > { %3091 = vmatmul.mubr.msk.bf16.vlgmr.msra.gmra.mrb[8].mxu0 %vm612_vm2, %v3864_v4 }
 0x2f7   : > { %3101 = vmatpush3.bf16.xpose.msra.mxu0 %v764_v14  ;;  %3102 = vmatprep.mubr.msk.bf16.mxu0 %vm3621_vm1, %v3620_v62 }
 0x2f8   : > { %3112 = vmatprep.subr.bf16.mxu0 %v3620_v62 }
 0x2fe   : > { %3103 = vmatmul.mubr.msk.bf16.vlgmr.msra.gmra.mrb[12].mxu0 %vm612_vm2, %v3871_v6 }
 0x2ff   : > { %3114 = vmatprep.mubr.msk.bf16.mxu0 %vm3621_vm1, %v3620_v62 }
 0x3c1   : > { %v653_v20 = vpop.f32.mrb[4].mxu0 }
 0x3c2   : > { %v654_v21 = vadd.f32 %v653_v20, %v3898_v19  ;;  %v3086_v22 = vpop.f32.mrb[5].mxu0 }
 0x3c3   : > { %v656_v23 = vpop.f32.mrb[6].mxu0 }
 0x3c4   : > { %v3087_v24 = vpop.f32.mrb[7].mxu0  ;;  %v806_v25 = vsel %vm612_vm2, %v654_v21, -inf }
 0x3c5   : > { %807 = vmax.xlane.f32.xlu0 %v806_v25 }
 0x3c7   : > { %v751_v26 = vpop.f32.mrb[0].mxu1 }
 0x3c8   : > { %v752_v27 = vadd.f32 %v751_v26, %v3898_v19  ;;  %v3098_v28 = vpop.f32.mrb[1].mxu1 }
 0x3c9   : > { %v702_v29 = vpop.f32.mrb[8].mxu0  ;;  %v754_v30 = vpop.f32.mrb[2].mxu1 }
 0x3ca   : > { %v703_v31 = vadd.f32 %v702_v29, %v3898_v19  ;;  %v3092_v32 = vpop.f32.mrb[9].mxu0  ;;  %v3099_v33 = vpop.f32.mrb[3].mxu1  ;;  %v812_v34 = vsel %vm612_vm2, %v752_v27, -inf }
 0x3cb   : > { %v705_v35 = vpop.f32.mrb[10].mxu0  ;;  %813 = vmax.xlane.f32.xlu0 %v812_v34 }
 0x3cc   : > { %v3093_v36 = vpop.f32.mrb[11].mxu0  ;;  %v809_v37 = vsel %vm612_vm2, %v703_v31, -inf }
 0x3cd   : > { %810 = vmax.xlane.f32.xlu1 %v809_v37 }
 0x3d1   : > { %v800_v38 = vpop.f32.mrb[12].mxu0 }
 0x3d2   : > { %v801_v39 = vadd.f32 %v800_v38, %v3898_v19  ;;  %v3104_v40 = vpop.f32.mrb[13].mxu0 }
 0x3d3   : > { %v803_v41 = vpop.f32.mrb[14].mxu0 }
 0x3d4   : > { %v3105_v42 = vpop.f32.mrb[15].mxu0  ;;  %v815_v43 = vsel %vm612_vm2, %v801_v39, -inf }
 0x3d5   : > { %816 = vmax.xlane.f32.xlu0 %v815_v43 }
 0x3de   : > { %903 = vrot.lane.b32.xlu1 %v3864_v4, %s3624_s24 }
 0x3e2   : > { %951 = vrot.lane.b32.xlu1 %v3868_v5, %s3624_s24 }
 0x3e6   : > { %999 = vrot.lane.b32.xlu1 %v3871_v6, %s3624_s24 }
 0x452   : > { %v808_v44 = vpop.xlane.xlu0 %807 }
 0x453   : > { %v818_v45 = vsub.f32 %v654_v21, %v808_v44 }
 0x455   : > { %v822_v48 = vmul.f32 1.442695, %v818_v45 }
 0x458   : > { %v814_v46 = vpop.xlane.xlu0 %813 }
 0x459   : > { %v820_v47 = vsub.f32 %v752_v27, %v814_v46 }
 0x45a   : > { %v811_v49 = vpop.xlane.xlu1 %810 }
 0x45b   : > { %v826_v50 = vmul.f32 1.442695, %v820_v47  ;;  %v819_v51 = vsub.f32 %v703_v31, %v811_v49 }
 0x45d   : > { %3412 = vpow2.f32 %v826_v50  ;;  %v824_v52 = vmul.f32 1.442695, %v819_v51 }
 0x45e   : > { %3414 = vpow2.f32 %v822_v48  ;;  %v904_v53 = vpop.permute.xlu1 %903 }
 0x45f   : > { %3416 = vpow2.f32 %v824_v52  ;;  %v909_v54 = vsel %vm859_vm4, %v904_v53, 0 }
 0x460   : > { %3113 = vmatpush3.bf16.msra.mxu0 %v909_v54 }
 0x461   : > { %3124 = vmatprep.subr.bf16.mxu0 %v3620_v62 }
 0x462   : > { %v817_v61 = vpop.xlane.xlu0 %816  ;;  %v952_v7 = vpop.permute.xlu1 %951 }
 0x463   : > { %v821_v63 = vsub.f32 %v801_v39, %v817_v61  ;;  %v957_v23 = vsel %vm859_vm4, %v952_v7, 0 }
 0x465   : > { %v828_v0 = vmul.f32 1.442695, %v821_v63 }
 0x466   : > { %v1000_v8 = vpop.permute.xlu1 %999 }
 0x467   : > { %v3413_v55 = vpop.eup %3412  ;;  %3418 = vpow2.f32 %v828_v0  ;;  %v1005_v20 = vsel %vm859_vm4, %v1000_v8, 0 }
 0x468   : > { %v3415_v56 = vpop.eup %3414  ;;  %v836_v57 = vsel %vm612_vm2, %v3413_v55, 0.0 }
 0x469   : > { %v3417_v58 = vpop.eup %3416  ;;  %837 = vadd.xlane.f32.xlu0 %v836_v57  ;;  %v830_v60 = vsel %vm612_vm2, %v3415_v56, 0.0 }
 0x46a   : > { %v833_v59 = vsel %vm612_vm2, %v3417_v58, 0.0 }
 0x46b   : > { %834 = vadd.xlane.f32.xlu1 %v833_v59 }
 0x46d   : > { %831 = vadd.xlane.f32.xlu0 %v830_v60 }
 0x471   : > { %v3419_v2 = vpop.eup %3418 }
 0x472   : > { %v839_v3 = vsel %vm612_vm2, %v3419_v2, 0.0 }
 0x47c   : > { %1103 = vrot.lane.b32.xlu1 %v3864_v4, %s3625_s14 }
 0x483   : > { %854 = vrot.lane.b32.xlu0 %v3862_v1, %s3624_s24 }
 0x487   : > { %1053 = vrot.lane.b32.xlu0 %v3862_v1, %s3625_s14 }
 0x48b   : > { %1051 = vrot.lane.b32.xlu0 %v3862_v1, %s3626_s18 }
 0x48f   : > { %1153 = vrot.lane.b32.xlu0 %v3868_v5, %s3625_s14 }
 0x493   : > { %1151 = vrot.lane.b32.xlu0 %v3868_v5, %s3626_s18 }
 0x4a0   : > { %840 = vadd.xlane.f32.xlu1 %v839_v3 }
 0x4b1   : > { %1101 = vrot.lane.b32.xlu1 %v3864_v4, %s3626_s18 }
 0x4b5   : > { %1203 = vrot.lane.b32.xlu1 %v3871_v6, %s3625_s14 }
 0x4b9   : > { %1201 = vrot.lane.b32.xlu1 %v3871_v6, %s3626_s18 }
 0x4f6   : > { %v838_v9 = vpop.xlane.xlu0 %837 }
 0x4f8   : > { %v835_v10 = vpop.xlane.xlu1 %834 }
 0x4f9   : > { %3420 = vrcp.f32 %v835_v10 }
 0x4fa   : > { %v832_v11 = vpop.xlane.xlu0 %831 }
 0x4fb   : > { %3422 = vrcp.f32 %v832_v11 }
 0x4fc   : > { %3424 = vrcp.f32 %v838_v9  ;;  %v1104_v32 = vpop.permute.xlu1 %1103 }
 0x4fd   : > { %v1109_v38 = vsel %vm612_vm2, %v1104_v32, 0 }
 0x4fe   : > { %v855_v12 = vpop.permute.xlu0 %854 }
 0x4ff   : > { %v861_v13 = vsel %vm859_vm4, %v855_v12, 0 }
 0x500   : > { %3107 = vmatpush3.bf16.msra.mxu1 %v861_v13 }
 0x501   : > { %3118 = vmatprep.subr.bf16.mxu1 %v3620_v62 }
 0x502   : > { %v1054_v25 = vpop.permute.xlu0 %1053 }
 0x503   : > { %v3421_v14 = vpop.eup %3420  ;;  %v1059_v28 = vsel %vm612_vm2, %v1054_v25, 0 }
 0x504   : > { %v847_v15 = vmul.f32 %v3421_v14, %v3417_v58 }
 0x505   : > { %v3423_v16 = vpop.eup %3422 }
 0x506   : > { %v846_v17 = vmul.f32 %v3423_v16, %v3415_v56  ;;  %v851_v18 = vpack.c.bf16 %v847_v15, %v847_v15  ;;  %v3425_v22 = vpop.eup %3424  ;;  %v1052_v27 = vpop.permute.xlu0 %1051 }
 0x507   : > { %v848_v24 = vmul.f32 %v3425_v22, %v3413_v55 }
 0x508   : > { %3115 = vmatmul.mubr.msk.bf16.vlgmr.msra.gmra.mrb[16].mxu0 %vm612_vm2, %v851_v18  ;;  %v850_v21 = vpack.c.bf16 %v846_v17, %v846_v17 }
 0x509   : > { %3125 = vmatpush3.bf16.msra.mxu0 %v1005_v20  ;;  %3126 = vmatprep.mubr.msk.bf16.mxu0 %vm3621_vm1, %v3620_v62  ;;  %v852_v26 = vpack.c.bf16 %v848_v24, %v848_v24 }
 0x50a   : > { %3109 = vmatmul.mubr.msk.bf16.vlgmr.msra.gmra.mrb[4].mxu1 %vm612_vm2, %v850_v21  ;;  %3136 = vmatprep.subr.bf16.mxu0 %v3620_v62  ;;  %v1154_v29 = vpop.permute.xlu0 %1153 }
 0x50b   : > { %3119 = vmatpush3.bf16.msra.mxu1 %v957_v23  ;;  %3120 = vmatprep.mubr.msk.bf16.mxu1 %vm3621_vm1, %v3620_v62  ;;  %v1159_v30 = vsel %vm612_vm2, %v1154_v29, 0 }
 0x50c   : > { %3130 = vmatprep.subr.bf16.mxu1 %v3620_v62 }
 0x50e   : > { %v1152_v31 = vpop.permute.xlu0 %1151 }
 0x512   : > { %3121 = vmatmul.mubr.msk.bf16.vlgmr.msra.gmra.mrb[8].mxu1 %vm612_vm2, %v852_v26 }
 0x513   : > { %3132 = vmatprep.mubr.msk.bf16.mxu1 %vm3621_vm1, %v3620_v62 }
 0x514   : > { %3131 = vmatpush3.bf16.xpose.msra.mxu1 %v1059_v28 }
 0x515   : > { %3142 = vmatprep.subr.bf16.mxu1 %v3620_v62 }
 0x51b   : > { %3133 = vmatmul.mubr.msk.bf16.vlgmr.msra.gmra.mrb[12].mxu1 %vm612_vm2, %v1052_v27 }
 0x51c   : > { %3143 = vmatpush3.bf16.xpose.msra.mxu1 %v1159_v30  ;;  %3144 = vmatprep.mubr.msk.bf16.mxu1 %vm3621_vm1, %v3620_v62 }
 0x51d   : > { %3154 = vmatprep.subr.bf16.mxu1 %v3620_v62 }
 0x523   : > { %3145 = vmatmul.mubr.msk.bf16.vlgmr.msra.gmra.mrb[16].mxu1 %vm612_vm2, %v1152_v31 }
 0x524   : > { %3156 = vmatprep.mubr.msk.bf16.mxu1 %vm3621_vm1, %v3620_v62 }
 0x52d   : > { %v841_v33 = vpop.xlane.xlu1 %840 }
 0x52e   : > { %3426 = vrcp.f32 %v841_v33 }
 0x531   : > { %v1102_v37 = vpop.permute.xlu1 %1101 }
 0x535   : > { %v1204_v39 = vpop.permute.xlu1 %1203 }
 0x536   : > { %v1209_v40 = vsel %vm612_vm2, %v1204_v39, 0 }
 0x538   : > { %v3427_v34 = vpop.eup %3426 }
 0x539   : > { %v849_v35 = vmul.f32 %v3427_v34, %v3419_v2  ;;  %v1202_v41 = vpop.permute.xlu1 %1201 }
 0x53b   : > { %v853_v36 = vpack.c.bf16 %v849_v35, %v849_v35 }
 0x53d   : > { %3127 = vmatmul.mubr.msk.bf16.vlgmr.msra.gmra.mrb[20].mxu0 %vm612_vm2, %v853_v36 }
 0x53e   : > { %3137 = vmatpush3.bf16.xpose.msra.mxu0 %v1109_v38  ;;  %3138 = vmatprep.mubr.msk.bf16.mxu0 %vm3621_vm1, %v3620_v62 }
 0x53f   : > { %3148 = vmatprep.subr.bf16.mxu0 %v3620_v62 }
 0x545   : > { %3139 = vmatmul.mubr.msk.bf16.vlgmr.msra.gmra.mrb[24].mxu0 %vm612_vm2, %v1102_v37 }
 0x546   : > { %3149 = vmatpush3.bf16.xpose.msra.mxu0 %v1209_v40  ;;  %3150 = vmatprep.mubr.msk.bf16.mxu0 %vm3621_vm1, %v3620_v62 }
 0x547   : > { %3160 = vmatprep.subr.bf16.mxu0 %v3620_v62 }
 0x54d   : > { %3151 = vmatmul.mubr.msk.bf16.vlgmr.msra.gmra.mrb[28].mxu0 %vm612_vm2, %v1202_v41 }
 0x54e   : > { %3162 = vmatprep.mubr.msk.bf16.mxu0 %vm3621_vm1, %v3620_v62 }
 0x5db   : > { %v945_v42 = vpop.f32.mrb[16].mxu0 }
 0x5dc   : > { %1048 = vst.msk [vmem:[#allocation2 + $0x8] sm:$0xff] %vm612_vm2, %v945_v42  ;;  %v3116_v43 = vpop.f32.mrb[17].mxu0 }
 0x5dd   : > { %v897_v44 = vpop.f32.mrb[4].mxu1  ;;  %v948_v45 = vpop.f32.mrb[18].mxu0 }
 0x5de   : > { %1047 = vst.msk [vmem:[#allocation2] sm:$0xff] %vm612_vm2, %v897_v44  ;;  %v3110_v46 = vpop.f32.mrb[5].mxu1  ;;  %v3117_v47 = vpop.f32.mrb[19].mxu0 }
 0x5df   : > { %v900_v48 = vpop.f32.mrb[6].mxu1 }
 0x5e0   : > { %v3111_v49 = vpop.f32.mrb[7].mxu1 }
 0x5e5   : > { %v993_v50 = vpop.f32.mrb[8].mxu1 }
 0x5e6   : > { %1049 = vst.msk [vmem:[#allocation2 + $0x10] sm:$0xff] %vm612_vm2, %v993_v50  ;;  %v3122_v51 = vpop.f32.mrb[9].mxu1 }
 0x5e7   : > { %v996_v52 = vpop.f32.mrb[10].mxu1 }
 0x5e8   : > { %v3123_v53 = vpop.f32.mrb[11].mxu1 }
 0x5ee   : > { %v1095_v54 = vpop.f32.mrb[12].mxu1 }
 0x5ef   : > { %v1096_v55 = vadd.f32 %v1095_v54, %v3898_v19  ;;  %v3134_v56 = vpop.f32.mrb[13].mxu1 }
 0x5f0   : > { %v1098_v57 = vpop.f32.mrb[14].mxu1 }
 0x5f1   : > { %v3135_v58 = vpop.f32.mrb[15].mxu1  ;;  %v1251_v59 = vsel %vm612_vm2, %v1096_v55, -inf }
 0x5f2   : > { %1252 = vmax.xlane.f32.xlu0 %v1251_v59 }
 0x5f6   : > { %v1195_v60 = vpop.f32.mrb[16].mxu1 }
 0x5f7   : > { %v1196_v61 = vadd.f32 %v1195_v60, %v3898_v19  ;;  %v3146_v63 = vpop.f32.mrb[17].mxu1 }
 0x5f8   : > { %v1198_v0 = vpop.f32.mrb[18].mxu1 }
 0x5f9   : > { %v3147_v2 = vpop.f32.mrb[19].mxu1  ;;  %v1257_v3 = vsel %vm612_vm2, %v1196_v61, -inf }
 0x5fa   : > { %1258 = vmax.xlane.f32.xlu0 %v1257_v3 }
 0x610   : > { %v1041_v7 = vpop.f32.mrb[20].mxu0 }
 0x611   : > { %1050 = vst.msk [vmem:[#allocation2 + $0x18] sm:$0xff] %vm612_vm2, %v1041_v7  ;;  %v3128_v8 = vpop.f32.mrb[21].mxu0 }
 0x612   : > { %v1044_v9 = vpop.f32.mrb[22].mxu0 }
 0x613   : > { %v3129_v10 = vpop.f32.mrb[23].mxu0 }
 0x618   : > { %v1145_v11 = vpop.f32.mrb[24].mxu0 }
 0x619   : > { %v1146_v12 = vadd.f32 %v1145_v11, %v3898_v19  ;;  %v3140_v13 = vpop.f32.mrb[25].mxu0 }
 0x61a   : > { %v1148_v14 = vpop.f32.mrb[26].mxu0 }
 0x61b   : > { %v3141_v15 = vpop.f32.mrb[27].mxu0  ;;  %v1254_v16 = vsel %vm612_vm2, %v1146_v12, -inf }
 0x61c   : > { %1255 = vmax.xlane.f32.xlu1 %v1254_v16 }
 0x620   : > { %v1245_v17 = vpop.f32.mrb[28].mxu0 }
 0x621   : > { %v1246_v18 = vadd.f32 %v1245_v17, %v3898_v19  ;;  %v3152_v20 = vpop.f32.mrb[29].mxu0 }
 0x622   : > { %v1248_v21 = vpop.f32.mrb[30].mxu0 }
 0x623   : > { %v3153_v22 = vpop.f32.mrb[31].mxu0  ;;  %v1260_v23 = vsel %vm612_vm2, %v1246_v18, -inf }
 0x624   : > { %1261 = vmax.xlane.f32.xlu0 %v1260_v23 }
 0x62d   : > { %1347 = vrot.lane.b32.xlu1 %v3864_v4, %s3627_s15 }
 0x631   : > { %1395 = vrot.lane.b32.xlu1 %v3868_v5, %s3627_s15 }
 0x635   : > { %1443 = vrot.lane.b32.xlu1 %v3871_v6, %s3627_s15 }
 0x67f   : > { %v1253_v24 = vpop.xlane.xlu0 %1252 }
 0x680   : > { %v1263_v25 = vsub.f32 %v1096_v55, %v1253_v24 }
 0x682   : > { %v1267_v26 = vmul.f32 1.442695, %v1263_v25 }
 0x684   : > { %3428 = vpow2.f32 %v1267_v26 }
 0x687   : > { %v1259_v31 = vpop.xlane.xlu0 %1258 }
 0x688   : > { %v1265_v35 = vsub.f32 %v1196_v61, %v1259_v31 }
 0x68a   : > { %v1271_v36 = vmul.f32 1.442695, %v1265_v35 }
 0x68e   : > { %v3429_v27 = vpop.eup %3428 }
 0x68f   : > { %v1275_v28 = vsel %vm612_vm2, %v3429_v27, 0.0 }
 0x690   : > { %1276 = vadd.xlane.f32.xlu0 %v1275_v28 }
 0x6a6   : > { %1299 = vrot.lane.b32.xlu0 %v3862_v1, %s3627_s15 }
 0x6a9   : > { %v1256_v29 = vpop.xlane.xlu1 %1255 }
 0x6aa   : > { %v1264_v30 = vsub.f32 %v1146_v12, %v1256_v29 }
 0x6ac   : > { %v1269_v32 = vmul.f32 1.442695, %v1264_v30 }
 0x6ad   : > { %v1348_v33 = vpop.permute.xlu1 %1347 }
 0x6ae   : > { %3430 = vpow2.f32 %v1269_v32  ;;  %v1353_v34 = vsel %vm859_vm4, %v1348_v33, 0 }
 0x6af   : > { %3161 = vmatpush3.bf16.msra.mxu0 %v1353_v34  ;;  %3432 = vpow2.f32 %v1271_v36 }
 0x6b0   : > { %3172 = vmatprep.subr.bf16.mxu0 %v3620_v62 }
 0x6b1   : > { %v1262_v41 = vpop.xlane.xlu0 %1261  ;;  %v1396_v51 = vpop.permute.xlu1 %1395 }
 0x6b2   : > { %v1266_v42 = vsub.f32 %v1246_v18, %v1262_v41  ;;  %v1401_v53 = vsel %vm859_vm4, %v1396_v51, 0 }
 0x6b4   : > { %v1273_v43 = vmul.f32 1.442695, %v1266_v42 }
 0x6b5   : > { %v1444_v54 = vpop.permute.xlu1 %1443 }
 0x6b6   : > { %3434 = vpow2.f32 %v1273_v43  ;;  %v1449_v60 = vsel %vm859_vm4, %v1444_v54, 0 }
 0x6b8   : > { %v3431_v37 = vpop.eup %3430 }
 0x6b9   : > { %v1278_v38 = vsel %vm612_vm2, %v3431_v37, 0.0  ;;  %v3433_v39 = vpop.eup %3432 }
 0x6ba   : > { %1279 = vadd.xlane.f32.xlu1 %v1278_v38  ;;  %v1281_v40 = vsel %vm612_vm2, %v3433_v39, 0.0 }
 0x6c0   : > { %v3435_v44 = vpop.eup %3434 }
 0x6c1   : > { %v1284_v45 = vsel %vm612_vm2, %v3435_v44, 0.0 }
 0x6c5   : > { %1282 = vadd.xlane.f32.xlu0 %v1281_v40 }
 0x6cb   : > { %1564 = vrot.lane.b32.xlu1 %v3864_v4, %s3628_s20 }
 0x6db   : > { %1514 = vrot.lane.b32.xlu0 %v3862_v1, %s3628_s20 }
 0x6df   : > { %1512 = vrot.lane.b32.xlu0 %v3862_v1, %s3629_s26 }
 0x6e3   : > { %1614 = vrot.lane.b32.xlu0 %v3868_v5, %s3628_s20 }
 0x6e7   : > { %1612 = vrot.lane.b32.xlu0 %v3868_v5, %s3629_s26 }
 0x6ef   : > { %1285 = vadd.xlane.f32.xlu1 %v1284_v45 }
 0x700   : > { %1562 = vrot.lane.b32.xlu1 %v3864_v4, %s3629_s26 }
 0x704   : > { %1664 = vrot.lane.b32.xlu1 %v3871_v6, %s3628_s20 }
 0x708   : > { %1662 = vrot.lane.b32.xlu1 %v3871_v6, %s3629_s26  ;;  %s3637_s26 = smov [#allocation8]  }
 0x71d   : > { %v1277_v46 = vpop.xlane.xlu0 %1276 }
 0x71e   : > { %3436 = vrcp.f32 %v1277_v46 }
 0x721   : > { %v1300_v47 = vpop.permute.xlu0 %1299 }
 0x722   : > { %v1305_v48 = vsel %vm859_vm4, %v1300_v47, 0 }
 0x723   : > { %3155 = vmatpush3.bf16.msra.mxu1 %v1305_v48 }
 0x724   : > { %3166 = vmatprep.subr.bf16.mxu1 %v3620_v62 }
 0x728   : > { %v3437_v49 = vpop.eup %3436 }
 0x729   : > { %v1291_v50 = vmul.f32 %v3437_v49, %v3429_v27 }
 0x72b   : > { %v1295_v52 = vpack.c.bf16 %v1291_v50, %v1291_v50 }
 0x72d   : > { %3157 = vmatmul.mubr.msk.bf16.vlgmr.msra.gmra.mrb[20].mxu1 %vm612_vm2, %v1295_v52 }
 0x72e   : > { %3167 = vmatpush3.bf16.msra.mxu1 %v1401_v53  ;;  %3168 = vmatprep.mubr.msk.bf16.mxu1 %vm3621_vm1, %v3620_v62 }
 0x72f   : > { %3178 = vmatprep.subr.bf16.mxu1 %v3620_v62 }
 0x747   : > { %v1280_v55 = vpop.xlane.xlu1 %1279 }
 0x748   : > { %3438 = vrcp.f32 %v1280_v55 }
 0x74b   : > { %v1565_v11 = vpop.permute.xlu1 %1564 }
 0x74c   : > { %v1570_v17 = vsel %vm612_vm2, %v1565_v11, 0 }
 0x752   : > { %v3439_v56 = vpop.eup %3438  ;;  %v1283_v57 = vpop.xlane.xlu0 %1282 }
 0x753   : > { %v1292_v58 = vmul.f32 %v3439_v56, %v3431_v37  ;;  %3440 = vrcp.f32 %v1283_v57 }
 0x755   : > { %v1296_v59 = vpack.c.bf16 %v1292_v58, %v1292_v58 }
 0x756   : > { %v1515_v61 = vpop.permute.xlu0 %1514 }
 0x757   : > { %3163 = vmatmul.mubr.msk.bf16.vlgmr.msra.gmra.mrb[32].mxu0 %vm612_vm2, %v1296_v59  ;;  %v1520_v7 = vsel %vm612_vm2, %v1515_v61, 0 }
 0x758   : > { %3173 = vmatpush3.bf16.msra.mxu0 %v1449_v60  ;;  %3174 = vmatprep.mubr.msk.bf16.mxu0 %vm3621_vm1, %v3620_v62 }
 0x759   : > { %3184 = vmatprep.subr.bf16.mxu0 %v3620_v62 }
 0x75a   : > { %v1513_v3 = vpop.permute.xlu0 %1512 }
 0x75d   : > { %v3441_v63 = vpop.eup %3440 }
 0x75e   : > { %v1293_v0 = vmul.f32 %v3441_v63, %v3433_v39  ;;  %v1615_v8 = vpop.permute.xlu0 %1614 }
 0x75f   : > { %v1620_v9 = vsel %vm612_vm2, %v1615_v8, 0 }
 0x760   : > { %v1297_v2 = vpack.c.bf16 %v1293_v0, %v1293_v0 }
 0x762   : > { %3169 = vmatmul.mubr.msk.bf16.vlgmr.msra.gmra.mrb[24].mxu1 %vm612_vm2, %v1297_v2  ;;  %v1613_v10 = vpop.permute.xlu0 %1612 }
 0x763   : > { %3179 = vmatpush3.bf16.xpose.msra.mxu1 %v1520_v7  ;;  %3180 = vmatprep.mubr.msk.bf16.mxu1 %vm3621_vm1, %v3620_v62 }
 0x764   : > { %3190 = vmatprep.subr.bf16.mxu1 %v3620_v62 }
 0x76a   : > { %3181 = vmatmul.mubr.msk.bf16.vlgmr.msra.gmra.mrb[28].mxu1 %vm612_vm2, %v1513_v3 }
 0x76b   : > { %3191 = vmatpush3.bf16.xpose.msra.mxu1 %v1620_v9  ;;  %3192 = vmatprep.mubr.msk.bf16.mxu1 %vm3621_vm1, %v3620_v62 }
 0x76c   : > { %3202 = vmatprep.subr.bf16.mxu1 %v3620_v62 }
 0x772   : > { %3193 = vmatmul.mubr.msk.bf16.vlgmr.msra.gmra.mrb[32].mxu1 %vm612_vm2, %v1613_v10 }
 0x773   : > { %3204 = vmatprep.mubr.msk.bf16.mxu1 %vm3621_vm1, %v3620_v62 }
 0x77c   : > { %v1286_v12 = vpop.xlane.xlu1 %1285 }
 0x77d   : > { %3442 = vrcp.f32 %v1286_v12 }
 0x780   : > { %v1563_v16 = vpop.permute.xlu1 %1562 }
 0x784   : > { %v1665_v18 = vpop.permute.xlu1 %1664 }
 0x785   : > { %v1670_v20 = vsel %vm612_vm2, %v1665_v18, 0 }
 0x787   : > { %v3443_v13 = vpop.eup %3442 }
 0x788   : > { %v1294_v14 = vmul.f32 %v3443_v13, %v3435_v44  ;;  %v1663_v21 = vpop.permute.xlu1 %1662 }
 0x78a   : > { %v1298_v15 = vpack.c.bf16 %v1294_v14, %v1294_v14 }
 0x78c   : > { %3175 = vmatmul.mubr.msk.bf16.vlgmr.msra.gmra.mrb[36].mxu0 %vm612_vm2, %v1298_v15 }
 0x78d   : > { %3185 = vmatpush3.bf16.xpose.msra.mxu0 %v1570_v17  ;;  %3186 = vmatprep.mubr.msk.bf16.mxu0 %vm3621_vm1, %v3620_v62 }
 0x78e   : > { %3196 = vmatprep.subr.bf16.mxu0 %v3620_v62 }
 0x794   : > { %3187 = vmatmul.mubr.msk.bf16.vlgmr.msra.gmra.mrb[40].mxu0 %vm612_vm2, %v1563_v16 }
 0x795   : > { %3197 = vmatpush3.bf16.xpose.msra.mxu0 %v1670_v20  ;;  %3198 = vmatprep.mubr.msk.bf16.mxu0 %vm3621_vm1, %v3620_v62 }
 0x796   : > { %3208 = vmatprep.subr.bf16.mxu0 %v3620_v62 }
 0x79c   : > { %3199 = vmatmul.mubr.msk.bf16.vlgmr.msra.gmra.mrb[44].mxu0 %vm612_vm2, %v1663_v21 }
 0x79d   : > { %3210 = vmatprep.mubr.msk.bf16.mxu0 %vm3621_vm1, %v3620_v62 }
 0x800   : > { %v4036_v22 = vpop.f32.mrb[20].mxu1 }
 0x801   : > { %v3158_v23 = vpop.f32.mrb[21].mxu1 }
 0x802   : > { %v1344_v24 = vpop.f32.mrb[22].mxu1 }
 0x803   : > { %v3159_v25 = vpop.f32.mrb[23].mxu1 }
 0x82a   : > { %v4038_v26 = vpop.f32.mrb[32].mxu0 }
 0x82b   : > { %v3164_v27 = vpop.f32.mrb[33].mxu0 }
 0x82c   : > { %v1392_v28 = vpop.f32.mrb[34].mxu0 }
 0x82d   : > { %v3165_v29 = vpop.f32.mrb[35].mxu0 }
 0x835   : > { %v4040_v30 = vpop.f32.mrb[24].mxu1 }
 0x836   : > { %v3170_v31 = vpop.f32.mrb[25].mxu1 }
 0x837   : > { %v1440_v32 = vpop.f32.mrb[26].mxu1 }
 0x838   : > { %v3171_v33 = vpop.f32.mrb[27].mxu1 }
 0x83d   : > { %v1556_v34 = vpop.f32.mrb[28].mxu1 }
 0x83e   : > { %v1557_v35 = vadd.f32 %v1556_v34, %v3898_v19  ;;  %v3182_v36 = vpop.f32.mrb[29].mxu1 }
 0x83f   : > { %v1559_v37 = vpop.f32.mrb[30].mxu1 }
 0x840   : > { %v3183_v38 = vpop.f32.mrb[31].mxu1  ;;  %v1712_v39 = vsel %vm612_vm2, %v1557_v35, -inf }
 0x841   : > { %1713 = vmax.xlane.f32.xlu0 %v1712_v39 }
 0x845   : > { %v1656_v40 = vpop.f32.mrb[32].mxu1 }
 0x846   : > { %v1657_v41 = vadd.f32 %v1656_v40, %v3898_v19  ;;  %v3194_v42 = vpop.f32.mrb[33].mxu1 }
 0x847   : > { %v1659_v43 = vpop.f32.mrb[34].mxu1 }
 0x848   : > { %v3195_v44 = vpop.f32.mrb[35].mxu1  ;;  %v1718_v45 = vsel %vm612_vm2, %v1657_v41, -inf }
 0x849   : > { %1719 = vmax.xlane.f32.xlu0 %v1718_v45 }
 0x85f   : > { %v4046_v46 = vpop.f32.mrb[36].mxu0 }
 0x860   : > { %v3176_v47 = vpop.f32.mrb[37].mxu0 }
 0x861   : > { %v1488_v48 = vpop.f32.mrb[38].mxu0 }
 0x862   : > { %v3177_v49 = vpop.f32.mrb[39].mxu0 }
 0x867   : > { %v1606_v50 = vpop.f32.mrb[40].mxu0 }
 0x868   : > { %v1607_v51 = vadd.f32 %v1606_v50, %v3898_v19  ;;  %v3188_v52 = vpop.f32.mrb[41].mxu0 }
 0x869   : > { %v1609_v53 = vpop.f32.mrb[42].mxu0 }
 0x86a   : > { %v3189_v54 = vpop.f32.mrb[43].mxu0  ;;  %v1715_v55 = vsel %vm612_vm2, %v1607_v51, -inf }
 0x86b   : > { %1716 = vmax.xlane.f32.xlu1 %v1715_v55 }
 0x86f   : > { %v1706_v56 = vpop.f32.mrb[44].mxu0 }
 0x870   : > { %v1707_v57 = vadd.f32 %v1706_v56, %v3898_v19  ;;  %v3200_v58 = vpop.f32.mrb[45].mxu0 }
 0x871   : > { %v1709_v59 = vpop.f32.mrb[46].mxu0 }
 0x872   : > { %v3201_v60 = vpop.f32.mrb[47].mxu0  ;;  %v1721_v61 = vsel %vm612_vm2, %v1707_v57, -inf }
 0x873   : > { %1722 = vmax.xlane.f32.xlu0 %v1721_v61 }
 0x87c   : > { %1808 = vrot.lane.b32.xlu1 %v3864_v4, %s3630_s23 }
 0x880   : > { %1856 = vrot.lane.b32.xlu1 %v3868_v5, %s3630_s23 }
 0x884   : > { %1904 = vrot.lane.b32.xlu1 %v3871_v6, %s3630_s23 }
 0x8ce   : > { %v1714_v63 = vpop.xlane.xlu0 %1713 }
 0x8cf   : > { %v1724_v0 = vsub.f32 %v1557_v35, %v1714_v63 }
 0x8d1   : > { %v1728_v2 = vmul.f32 1.442695, %v1724_v0 }
 0x8d3   : > { %3444 = vpow2.f32 %v1728_v2 }
 0x8d6   : > { %v1720_v10 = vpop.xlane.xlu0 %1719 }
 0x8d7   : > { %v1726_v14 = vsub.f32 %v1657_v41, %v1720_v10 }
 0x8d9   : > { %v1732_v15 = vmul.f32 1.442695, %v1726_v14 }
 0x8dd   : > { %v3445_v3 = vpop.eup %3444 }
 0x8de   : > { %v1736_v7 = vsel %vm612_vm2, %v3445_v3, 0.0 }
 0x8df   : > { %1737 = vadd.xlane.f32.xlu0 %v1736_v7 }
 0x8f5   : > { %1760 = vrot.lane.b32.xlu0 %v3862_v1, %s3630_s23  ;;  %s3548_s23 = sshll.u32 %s3637_s26, 4  ;;  %s3549_s23 = int_to_ptr.vmem [resolvable:$false] %s3548_s23 }
 0x8f8   : > { %v1717_v8 = vpop.xlane.xlu1 %1716 }
 0x8f9   : > { %v1725_v9 = vsub.f32 %v1607_v51, %v1717_v8 }
 0x8fb   : > { %v1730_v11 = vmul.f32 1.442695, %v1725_v9 }
 0x8fc   : > { %v1809_v12 = vpop.permute.xlu1 %1808 }
 0x8fd   : > { %3446 = vpow2.f32 %v1730_v11  ;;  %v1814_v13 = vsel %vm859_vm4, %v1809_v12, 0 }
 0x8fe   : > { %3209 = vmatpush3.bf16.msra.mxu0 %v1814_v13  ;;  %3448 = vpow2.f32 %v1732_v15 }
 0x8ff   : > { %3220 = vmatprep.subr.bf16.mxu0 %v3620_v62 }
 0x900   : > { %v1723_v21 = vpop.xlane.xlu0 %1722  ;;  %v1857_v34 = vpop.permute.xlu1 %1856 }
 0x901   : > { %v1727_v23 = vsub.f32 %v1707_v57, %v1723_v21  ;;  %v1862_v36 = vsel %vm859_vm4, %v1857_v34, 0 }
 0x903   : > { %v1734_v24 = vmul.f32 1.442695, %v1727_v23 }
 0x904   : > { %v1905_v37 = vpop.permute.xlu1 %1904 }
 0x905   : > { %3450 = vpow2.f32 %v1734_v24  ;;  %v1910_v43 = vsel %vm859_vm4, %v1905_v37, 0 }
 0x907   : > { %v3447_v16 = vpop.eup %3446 }
 0x908   : > { %v1739_v17 = vsel %vm612_vm2, %v3447_v16, 0.0  ;;  %v3449_v18 = vpop.eup %3448 }
 0x909   : > { %1740 = vadd.xlane.f32.xlu1 %v1739_v17  ;;  %v1742_v20 = vsel %vm612_vm2, %v3449_v18, 0.0 }
 0x90f   : > { %v3451_v25 = vpop.eup %3450 }
 0x910   : > { %v1745_v27 = vsel %vm612_vm2, %v3451_v25, 0.0 }
 0x914   : > { %1743 = vadd.xlane.f32.xlu0 %v1742_v20 }
 0x91a   : > { %2025 = vrot.lane.b32.xlu1 %v3864_v4, %s3631_s27 }
 0x92a   : > { %1975 = vrot.lane.b32.xlu0 %v3862_v1, %s3631_s27 }
 0x92e   : > { %1973 = vrot.lane.b32.xlu0 %v3862_v1, %s3632_s28 }
 0x932   : > { %2075 = vrot.lane.b32.xlu0 %v3868_v5, %s3631_s27 }
 0x936   : > { %2073 = vrot.lane.b32.xlu0 %v3868_v5, %s3632_s28 }
 0x93e   : > { %1746 = vadd.xlane.f32.xlu1 %v1745_v27 }
 0x94f   : > { %2023 = vrot.lane.b32.xlu1 %v3864_v4, %s3632_s28 }
 0x953   : > { %2125 = vrot.lane.b32.xlu1 %v3871_v6, %s3631_s27  ;;  %s3550_s27 = scalar_lea.vmem %s3549_s23, 1024 }
 0x957   : > { %2123 = vrot.lane.b32.xlu1 %v3871_v6, %s3632_s28  ;;  %s435_s28 = sand.u32 1, %s3606_s22  }
 0x96c   : > { %v1738_v28 = vpop.xlane.xlu0 %1737 }
 0x96d   : > { %3452 = vrcp.f32 %v1738_v28 }
 0x970   : > { %v1761_v29 = vpop.permute.xlu0 %1760 }
 0x971   : > { %v1766_v31 = vsel %vm859_vm4, %v1761_v29, 0 }
 0x972   : > { %3203 = vmatpush3.bf16.msra.mxu1 %v1766_v31 }
 0x973   : > { %3214 = vmatprep.subr.bf16.mxu1 %v3620_v62 }
 0x977   : > { %v3453_v32 = vpop.eup %3452 }
 0x978   : > { %v1752_v33 = vmul.f32 %v3453_v32, %v3445_v3 }
 0x97a   : > { %v1756_v35 = vpack.c.bf16 %v1752_v33, %v1752_v33 }
 0x97c   : > { %3205 = vmatmul.mubr.msk.bf16.vlgmr.msra.gmra.mrb[36].mxu1 %vm612_vm2, %v1756_v35 }
 0x97d   : > { %3215 = vmatpush3.bf16.msra.mxu1 %v1862_v36  ;;  %3216 = vmatprep.mubr.msk.bf16.mxu1 %vm3621_vm1, %v3620_v62 }
 0x97e   : > { %3226 = vmatprep.subr.bf16.mxu1 %v3620_v62 }
 0x996   : > { %v1741_v38 = vpop.xlane.xlu1 %1740 }
 0x997   : > { %3454 = vrcp.f32 %v1741_v38 }
 0x99a   : > { %v2026_v54 = vpop.permute.xlu1 %2025 }
 0x99b   : > { %v2031_v60 = vsel %vm612_vm2, %v2026_v54, 0 }
 0x9a1   : > { %v3455_v39 = vpop.eup %3454  ;;  %v1744_v40 = vpop.xlane.xlu0 %1743 }
 0x9a2   : > { %v1753_v41 = vmul.f32 %v3455_v39, %v3447_v16  ;;  %3456 = vrcp.f32 %v1744_v40 }
 0x9a4   : > { %v1757_v42 = vpack.c.bf16 %v1753_v41, %v1753_v41 }
 0x9a5   : > { %v1976_v44 = vpop.permute.xlu0 %1975 }
 0x9a6   : > { %3211 = vmatmul.mubr.msk.bf16.vlgmr.msra.gmra.mrb[48].mxu0 %vm612_vm2, %v1757_v42  ;;  %v1981_v50 = vsel %vm612_vm2, %v1976_v44, 0 }
 0x9a7   : > { %3221 = vmatpush3.bf16.msra.mxu0 %v1910_v43  ;;  %3222 = vmatprep.mubr.msk.bf16.mxu0 %vm3621_vm1, %v3620_v62 }
 0x9a8   : > { %3232 = vmatprep.subr.bf16.mxu0 %v3620_v62 }
 0x9a9   : > { %v1974_v49 = vpop.permute.xlu0 %1973 }
 0x9ac   : > { %v3457_v45 = vpop.eup %3456 }
 0x9ad   : > { %v1754_v47 = vmul.f32 %v3457_v45, %v3449_v18  ;;  %v2076_v51 = vpop.permute.xlu0 %2075 }
 0x9ae   : > { %v2081_v52 = vsel %vm612_vm2, %v2076_v51, 0 }
 0x9af   : > { %v1758_v48 = vpack.c.bf16 %v1754_v47, %v1754_v47 }
 0x9b1   : > { %3217 = vmatmul.mubr.msk.bf16.vlgmr.msra.gmra.mrb[40].mxu1 %vm612_vm2, %v1758_v48  ;;  %v2074_v53 = vpop.permute.xlu0 %2073 }
 0x9b2   : > { %3227 = vmatpush3.bf16.xpose.msra.mxu1 %v1981_v50  ;;  %3228 = vmatprep.mubr.msk.bf16.mxu1 %vm3621_vm1, %v3620_v62 }
 0x9b3   : > { %3238 = vmatprep.subr.bf16.mxu1 %v3620_v62 }
 0x9b9   : > { %3229 = vmatmul.mubr.msk.bf16.vlgmr.msra.gmra.mrb[44].mxu1 %vm612_vm2, %v1974_v49 }
 0x9ba   : > { %3239 = vmatpush3.bf16.xpose.msra.mxu1 %v2081_v52  ;;  %3240 = vmatprep.mubr.msk.bf16.mxu1 %vm3621_vm1, %v3620_v62 }
 0x9bb   : > { %3250 = vmatprep.subr.bf16.mxu1 %v3620_v62 }
 0x9c1   : > { %3241 = vmatmul.mubr.msk.bf16.vlgmr.msra.gmra.mrb[48].mxu1 %vm612_vm2, %v2074_v53 }
 0x9c2   : > { %3252 = vmatprep.mubr.msk.bf16.mxu1 %vm3621_vm1, %v3620_v62 }
 0x9cb   : > { %v1747_v55 = vpop.xlane.xlu1 %1746 }
 0x9cc   : > { %3458 = vrcp.f32 %v1747_v55 }
 0x9cf   : > { %v2024_v59 = vpop.permute.xlu1 %2023 }
 0x9d3   : > { %v2126_v61 = vpop.permute.xlu1 %2125 }
 0x9d4   : > { %v2131_v63 = vsel %vm612_vm2, %v2126_v61, 0 }
 0x9d6   : > { %v3459_v56 = vpop.eup %3458 }
 0x9d7   : > { %v1755_v57 = vmul.f32 %v3459_v56, %v3451_v25  ;;  %v2124_v0 = vpop.permute.xlu1 %2123 }
 0x9d9   : > { %v1759_v58 = vpack.c.bf16 %v1755_v57, %v1755_v57 }
 0x9db   : > { %3223 = vmatmul.mubr.msk.bf16.vlgmr.msra.gmra.mrb[52].mxu0 %vm612_vm2, %v1759_v58 }
 0x9dc   : > { %3233 = vmatpush3.bf16.xpose.msra.mxu0 %v2031_v60  ;;  %3234 = vmatprep.mubr.msk.bf16.mxu0 %vm3621_vm1, %v3620_v62 }
 0x9dd   : > { %3244 = vmatprep.subr.bf16.mxu0 %v3620_v62 }
 0x9e3   : > { %3235 = vmatmul.mubr.msk.bf16.vlgmr.msra.gmra.mrb[56].mxu0 %vm612_vm2, %v2024_v59 }
 0x9e4   : > { %3245 = vmatpush3.bf16.xpose.msra.mxu0 %v2131_v63  ;;  %3246 = vmatprep.mubr.msk.bf16.mxu0 %vm3621_vm1, %v3620_v62 }
 0x9e5   : > { %3256 = vmatprep.subr.bf16.mxu0 %v3620_v62 }
 0x9eb   : > { %3247 = vmatmul.mubr.msk.bf16.vlgmr.msra.gmra.mrb[60].mxu0 %vm612_vm2, %v2124_v0 }
 0x9ec   : > { %3258 = vmatprep.mubr.msk.bf16.mxu0 %vm3621_vm1, %v3620_v62 }
 0xa4f   : > { %v4108_v2 = vpop.f32.mrb[36].mxu1 }
 0xa50   : > { %v3206_v3 = vpop.f32.mrb[37].mxu1 }
 0xa51   : > { %v1805_v7 = vpop.f32.mrb[38].mxu1 }
 0xa52   : > { %v3207_v8 = vpop.f32.mrb[39].mxu1 }
 0xa79   : > { %v4110_v9 = vpop.f32.mrb[48].mxu0 }
 0xa7a   : > { %v3212_v10 = vpop.f32.mrb[49].mxu0 }
 0xa7b   : > { %v1853_v11 = vpop.f32.mrb[50].mxu0 }
 0xa7c   : > { %v3213_v12 = vpop.f32.mrb[51].mxu0 }
 0xa84   : > { %v4112_v13 = vpop.f32.mrb[40].mxu1 }
 0xa85   : > { %v3218_v14 = vpop.f32.mrb[41].mxu1 }
 0xa86   : > { %v1901_v15 = vpop.f32.mrb[42].mxu1 }
 0xa87   : > { %v3219_v16 = vpop.f32.mrb[43].mxu1 }
 0xa8c   : > { %v2017_v17 = vpop.f32.mrb[44].mxu1 }
 0xa8d   : > { %v2018_v18 = vadd.f32 %v2017_v17, %v3898_v19  ;;  %v3230_v20 = vpop.f32.mrb[45].mxu1 }
 0xa8e   : > { %v2020_v21 = vpop.f32.mrb[46].mxu1 }
 0xa8f   : > { %v3231_v23 = vpop.f32.mrb[47].mxu1  ;;  %v2173_v24 = vsel %vm612_vm2, %v2018_v18, -inf }
 0xa90   : > { %2174 = vmax.xlane.f32.xlu0 %v2173_v24 }
 0xa94   : > { %v2117_v25 = vpop.f32.mrb[48].mxu1 }
 0xa95   : > { %v2118_v27 = vadd.f32 %v2117_v25, %v3898_v19  ;;  %v3242_v28 = vpop.f32.mrb[49].mxu1 }
 0xa96   : > { %v2120_v29 = vpop.f32.mrb[50].mxu1 }
 0xa97   : > { %v3243_v31 = vpop.f32.mrb[51].mxu1  ;;  %v2179_v32 = vsel %vm612_vm2, %v2118_v27, -inf }
 0xa98   : > { %2180 = vmax.xlane.f32.xlu0 %v2179_v32 }
 0xaae   : > { %v1946_v33 = vpop.f32.mrb[52].mxu0 }
 0xaaf   : > { %v3224_v34 = vpop.f32.mrb[53].mxu0 }
 0xab0   : > { %v1949_v35 = vpop.f32.mrb[54].mxu0 }
 0xab1   : > { %v3225_v36 = vpop.f32.mrb[55].mxu0 }
 0xab6   : > { %v2067_v37 = vpop.f32.mrb[56].mxu0 }
 0xab7   : > { %v2068_v38 = vadd.f32 %v2067_v37, %v3898_v19  ;;  %v3236_v39 = vpop.f32.mrb[57].mxu0 }
 0xab8   : > { %v2070_v40 = vpop.f32.mrb[58].mxu0 }
 0xab9   : > { %v3237_v41 = vpop.f32.mrb[59].mxu0  ;;  %v2176_v42 = vsel %vm612_vm2, %v2068_v38, -inf }
 0xaba   : > { %2177 = vmax.xlane.f32.xlu1 %v2176_v42 }
 0xabe   : > { %v2167_v43 = vpop.f32.mrb[60].mxu0 }
 0xabf   : > { %v2168_v44 = vadd.f32 %v2167_v43, %v3898_v19  ;;  %v3248_v45 = vpop.f32.mrb[61].mxu0 }
 0xac0   : > { %v2170_v47 = vpop.f32.mrb[62].mxu0 }
 0xac1   : > { %v3249_v48 = vpop.f32.mrb[63].mxu0  ;;  %v2182_v49 = vsel %vm612_vm2, %v2168_v44, -inf }
 0xac2   : > { %2183 = vmax.xlane.f32.xlu0 %v2182_v49 }
 0xb1d   : > { %v2175_v50 = vpop.xlane.xlu0 %2174 }
 0xb1e   : > { %v2185_v51 = vsub.f32 %v2018_v18, %v2175_v50  ;;  %v3392_v50 = vld [vmem:[#allocation3] sm:$0xff]  }
 0xb20   : > { %v2189_v52 = vmul.f32 1.442695, %v2185_v51  ;;  %v3393_v51 = vld [vmem:[#allocation3 + $0x8] sm:$0xff]  }
 0xb22   : > { %3460 = vpow2.f32 %v2189_v52 }
 0xb25   : > { %v2181_v53 = vpop.xlane.xlu0 %2180 }
 0xb26   : > { %v2187_v54 = vsub.f32 %v2118_v27, %v2181_v53 }
 0xb28   : > { %v2193_v55 = vmul.f32 1.442695, %v2187_v54 }
 0xb2a   : > { %3462 = vpow2.f32 %v2193_v55 }
 0xb2c   : > { %v3461_v56 = vpop.eup %3460 }
 0xb2d   : > { %v2197_v57 = vsel %vm612_vm2, %v3461_v56, 0.0 }
 0xb2e   : > { %2198 = vadd.xlane.f32.xlu0 %v2197_v57 }
 0xb34   : > { %v3463_v58 = vpop.eup %3462 }
 0xb35   : > { %v2203_v19 = vsel %vm612_vm2, %v3463_v58, 0.0 }
 0xb36   : > { %2204 = vadd.xlane.f32.xlu0 %v2203_v19 }
 0xb47   : > { %v2178_v59 = vpop.xlane.xlu1 %2177 }
 0xb48   : > { %v2186_v60 = vsub.f32 %v2068_v38, %v2178_v59 }
 0xb4a   : > { %v2191_v61 = vmul.f32 1.442695, %v2186_v60 }
 0xb4c   : > { %3464 = vpow2.f32 %v2191_v61  ;;  %2221 = vrot.lane.b32.xlu0 %v3862_v1, %s3633_s29 }
 0xb4f   : > { %v2184_v1 = vpop.xlane.xlu0 %2183 }
 0xb50   : > { %1495 = vrot.lane.b32.xlu0 %v4036_v22, %s3634_s16  ;;  %v2188_v3 = vsub.f32 %v2168_v44, %v2184_v1 }
 0xb52   : > { %v2195_v7 = vmul.f32 1.442695, %v2188_v3  ;;  %v2961_v3 = vld [vmem:[%s4308_s5] ss:$0 sm:$0xff] }
 0xb54   : > { %1499 = vrot.lane.b32.xlu0 %v4040_v30, %s3634_s16  ;;  %3466 = vpow2.f32 %v2195_v7 }
 0xb56   : > { %v3465_v63 = vpop.eup %3464 }
 0xb57   : > { %v2200_v0 = vsel %vm612_vm2, %v3465_v63, 0.0 }
 0xb58   : > { %1956 = vrot.lane.b32.xlu0 %v4108_v2, %s3635_s19  ;;  %2201 = vadd.xlane.f32.xlu1 %v2200_v0 }
 0xb5c   : > { %1960 = vrot.lane.b32.xlu0 %v4112_v13, %s3635_s19 }
 0xb5e   : > { %v3467_v22 = vpop.eup %3466 }
 0xb5f   : > { %v2206_v30 = vsel %vm612_vm2, %v3467_v22, 0.0 }
 0xb69   : > { %2269 = vrot.lane.b32.xlu1 %v3864_v4, %s3633_s29 }
 0xb6d   : > { %2317 = vrot.lane.b32.xlu1 %v3868_v5, %s3633_s29 }
 0xb91   : > { %2207 = vadd.xlane.f32.xlu1 %v2206_v30 }
 0xba2   : > { %2365 = vrot.lane.b32.xlu1 %v3871_v6, %s3633_s29  ;;  %s2920_s29 = sshll.u32 %s435_s28, 5 }
 0xba3   : > { %s437_s21 = scalar_lea.vmem [#allocation8], %s2920_s29 }
 0xba4   : > { %s2828_s24 = sshll.u32 %s437_s21, 4  ;;  %s4251_s24 = int_to_ptr.vmem [resolvable:$true] %s2828_s24 }
 0xba5   : > { %s3544_s20 = scalar_lea.vmem %s4251_s24, 512  ;;  %p3551_p4 = scmp.lt.s32.totalorder %s4251_s24, %s3549_s23 }
 0xba6   : > { %1497 = vrot.lane.b32.xlu1 %v4038_v26, %s3634_s16  ;;  %p3545_p12 = scmp.ne.s32.totalorder %s4251_s24, %s3544_s20  ;;  %p3552_p7 = scmp.lt.s32.totalorder %s3550_s27, %s3544_s20 }
 0xba8   : > { %p3546_p2 = pnand %p3545_p12, %p4340_p1  ;;  %p3553_p8 = por %p3552_p7, %p3551_p4 }
 0xbaa   : > { %1501 = vrot.lane.b32.xlu1 %v4046_v46, %s3634_s16  ;;  %p3547_p3 = pneg %p3546_p2 }
 0xbac   : > { %p3554_p11 = pnand %p3553_p8, %p3547_p3 }
 0xbae   : > { %1958 = vrot.lane.b32.xlu1 %v4110_v9, %s3635_s19 }
 0xbb2   : > { %1962 = vrot.lane.b32.xlu1 %v1946_v33, %s3635_s19 }
 0xbbb   : > { %v2199_v4 = vpop.xlane.xlu0 %2198 }
 0xbbc   : > { %3468 = vrcp.f32 %v2199_v4 }
 0xbc3   : > { %v2205_v5 = vpop.xlane.xlu0 %2204 }
 0xbc4   : > { %3470 = vrcp.f32 %v2205_v5 }
 0xbc6   : > { %v3469_v2 = vpop.eup %3468 }
 0xbc7   : > { %v2213_v8 = vmul.f32 %v3469_v2, %v3461_v56  ;;  %v2222_v10 = vpop.permute.xlu0 %2221 }
 0xbc8   : > { %v2227_v11 = vsel %vm859_vm4, %v2222_v10, 0 }
 0xbc9   : > { %3251 = vmatpush3.bf16.msra.mxu1 %v2227_v11  ;;  %v2217_v6 = vpack.c.bf16 %v2213_v8, %v2213_v8  ;;  %v3484_v8 = vld [vmem:[%s3828_s30] sm:$0xff] }
 0xbca   : > { %3262 = vmatprep.subr.bf16.mxu1 %v3620_v62 }
 0xbcb   : > { %v1496_v26 = vpop.permute.xlu0 %1495 }
 0xbcc   : > { %1508 = vst.msk [vmem:[#allocation2] sm:$0xff] %vm1507_vm5, %v1496_v26  ;;  %3253 = vmatmul.mubr.msk.bf16.vlgmr.msra.gmra.mrb[52].mxu1 %vm612_vm2, %v2217_v6  ;;  %v3485_v6 = vld [vmem:[%s3828_s30 + $0x10] sm:$0xff] }
 0xbcd   : > { %3264 = vmatprep.mubr.msk.bf16.mxu1 %vm3621_vm1, %v3620_v62 }
 0xbce   : > { %v3471_v14 = vpop.eup %3470 }
 0xbcf   : > { %v1500_v46 = vpop.permute.xlu0 %1499  ;;  %v2215_v17 = vmul.f32 %v3471_v14, %v3463_v58 }
 0xbd0   : > { %1510 = vst.msk [vmem:[#allocation2 + $0x10] sm:$0xff] %vm1507_vm5, %v1500_v46 }
 0xbd1   : > { %v2219_v23 = vpack.c.bf16 %v2215_v17, %v2215_v17 }
 0xbd3   : > { %v1957_v9 = vpop.permute.xlu0 %1956 }
 0xbd4   : > { %1969 = vst.msk [vmem:[#allocation2] sm:$0xff] %vm1968_vm6, %v1957_v9  ;;  %v3486_v9 = vld [vmem:[%s3828_s30 + $0x8] sm:$0xff] }
 0xbd7   : > { %v1961_v12 = vpop.permute.xlu0 %1960 }
 0xbd8   : > { %1971 = vst.msk [vmem:[#allocation2 + $0x10] sm:$0xff] %vm1968_vm6, %v1961_v12 }
 0xbe5   : > { %v2202_v13 = vpop.xlane.xlu1 %2201 }
 0xbe6   : > { %3472 = vrcp.f32 %v2202_v13 }
 0xbe9   : > { %v2270_v15 = vpop.permute.xlu1 %2269 }
 0xbea   : > { %v2275_v16 = vsel %vm859_vm4, %v2270_v15, 0  ;;  %v3487_v15 = vld [vmem:[%s3828_s30 + $0x18] sm:$0xff]  ;;  %s2987_s30 = sshll.u32 %s3725_s25, 9  ;;  %s4261_s25 = scalar_lea.sflag [#allocation5], %s435_s28 }
 0xbeb   : > { %3257 = vmatpush3.bf16.msra.mxu0 %v2275_v16  ;;  %s4257_s15 = scalar_lea.hbm %s4315_s12, %s2987_s30 }
 0xbec   : > { %3268 = vmatprep.subr.bf16.mxu0 %v3620_v62 }
 0xbed   : > { %v2318_v18 = vpop.permute.xlu1 %2317 }
 0xbee   : > { %v2323_v20 = vsel %vm859_vm4, %v2318_v18, 0 }
 0xbef   : > { %3263 = vmatpush3.bf16.msra.mxu1 %v2323_v20 }
 0xbf0   : > { %v3473_v21 = vpop.eup %3472  ;;  %3274 = vmatprep.subr.bf16.mxu1 %v3392_v50 }
 0xbf1   : > { %v2214_v24 = vmul.f32 %v3473_v21, %v3465_v63 }
 0xbf2   : > { %3265 = vmatmul.mubr.msk.bf16.vlgmr.msra.gmra.mrb[56].mxu1 %vm612_vm2, %v2219_v23 }
 0xbf3   : > { %v2218_v25 = vpack.c.bf16 %v2214_v24, %v2214_v24  ;;  %3275 = vmatpush3.bf16.msra.mxu1 %v3392_v50  ;;  %v3401_v50 = vld [vmem:[%s4313_s10 + $0x28] sm:$0xff]  }
 0xbf4   : > { %3276 = vmatprep.subr.bf16.mxu1 %v3393_v51 }
 0xbf5   : > { %3259 = vmatmul.mubr.msk.bf16.vlgmr.msra.gmra.mrb[64].mxu0 %vm612_vm2, %v2218_v25 }
 0xbf6   : > { %3270 = vmatprep.mubr.msk.bf16.mxu0 %vm3621_vm1, %v3620_v62 }
 0xbf7   : > { %3277 = vmatpush3.bf16.msra.mxu1 %v3393_v51 }
 0xc1e   : > { %v2208_v27 = vpop.xlane.xlu1 %2207 }
 0xc1f   : > { %3474 = vrcp.f32 %v2208_v27 }
 0xc22   : > { %v2366_v28 = vpop.permute.xlu1 %2365 }
 0xc23   : > { %v2371_v29 = vsel %vm859_vm4, %v2366_v28, 0 }
 0xc24   : > { %3269 = vmatpush3.bf16.msra.mxu0 %v2371_v29 }
 0xc26   : > { %v1498_v31 = vpop.permute.xlu1 %1497 }
 0xc27   : > { %1509 = vst.msk [vmem:[#allocation2 + $0x8] sm:$0xff] %vm1507_vm5, %v1498_v31 }
 0xc29   : > { %v3475_v32 = vpop.eup %3474 }
 0xc2a   : > { %v2216_v33 = vmul.f32 %v3475_v32, %v3467_v22  ;;  %v1502_v34 = vpop.permute.xlu1 %1501 }
 0xc2b   : > { %1511 = vst.msk [vmem:[#allocation2 + $0x18] sm:$0xff] %vm1507_vm5, %v1502_v34 }
 0xc2c   : > { %v2220_v35 = vpack.c.bf16 %v2216_v33, %v2216_v33 }
 0xc2e   : > { %3271 = vmatmul.mubr.msk.bf16.vlgmr.msra.gmra.mrb[68].mxu0 %vm612_vm2, %v2220_v35  ;;  %v1959_v36 = vpop.permute.xlu1 %1958 }
 0xc2f   : > { %1970 = vst.msk [vmem:[#allocation2 + $0x8] sm:$0xff] %vm1968_vm6, %v1959_v36 }
 0xc32   : > { %v1963_v62 = vpop.permute.xlu1 %1962 }
 0xc33   : > { %1972 = vst.msk [vmem:[#allocation2 + $0x18] sm:$0xff] %vm1968_vm6, %v1963_v62 }
 0xc9f   : > { %v2263_v37 = vpop.f32.mrb[52].mxu1 }
 0xca0   : > { %2417 = vrot.lane.b32.xlu0 %v2263_v37, %s3636_s17  ;;  %v3254_v38 = vpop.f32.mrb[53].mxu1 }
 0xca1   : > { %v2266_v39 = vpop.f32.mrb[54].mxu1 }
 0xca2   : > { %v3255_v40 = vpop.f32.mrb[55].mxu1 }
 0xcc5   : > { %v2359_v41 = vpop.f32.mrb[56].mxu1 }
 0xcc6   : > { %2421 = vrot.lane.b32.xlu0 %v2359_v41, %s3636_s17  ;;  %v3266_v42 = vpop.f32.mrb[57].mxu1 }
 0xcc7   : > { %v2362_v43 = vpop.f32.mrb[58].mxu1  ;;  %v3394_v42 = vld [vmem:[#allocation6] sm:$0xff]  }
 0xcc8   : > { %v2311_v44 = vpop.f32.mrb[64].mxu0  ;;  %v3267_v45 = vpop.f32.mrb[59].mxu1  ;;  %3282 = vmatprep.subr.bf16.mxu0 %v3394_v42  ;;  %v3395_v43 = vld [vmem:[#allocation6 + $0x8] sm:$0xff]  }
 0xcc9   : > { %2419 = vrot.lane.b32.xlu1 %v2311_v44, %s3636_s17  ;;  %v3260_v47 = vpop.f32.mrb[65].mxu0  ;;  %3283 = vmatpush3.bf16.msra.mxu0 %v3394_v42  ;;  %v3396_v44 = vld [vmem:[%s4313_s10] sm:$0xff]   ;;  %v3397_v45 = vld [vmem:[%s4313_s10 + $0x8] sm:$0xff]  }
 0xcca   : > { %v2314_v48 = vpop.f32.mrb[66].mxu0  ;;  %3284 = vmatprep.subr.bf16.mxu0 %v3395_v43  ;;  %3290 = vmatprep.subr.bf16.mxu1 %v3396_v44  ;;  %v3398_v47 = vld [vmem:[%s4313_s10 + $0x10] sm:$0xff]  }
 0xccb   : > { %v3261_v49 = vpop.f32.mrb[67].mxu0  ;;  %v3399_v48 = vld [vmem:[%s4313_s10 + $0x18] sm:$0xff]  }
 0xccc   : > { %v3400_v49 = vld [vmem:[%s4313_s10 + $0x20] sm:$0xff]  }
 0xccd   : > { %3285 = vmatpush3.bf16.msra.mxu0 %v3395_v43 }
 0xd01   : > { %v2407_v52 = vpop.f32.mrb[68].mxu0 }
 0xd02   : > { %2423 = vrot.lane.b32.xlu1 %v2407_v52, %s3636_s17  ;;  %v3272_v53 = vpop.f32.mrb[69].mxu0 }
 0xd03   : > { %v2410_v54 = vpop.f32.mrb[70].mxu0 }
 0xd04   : > { %v3273_v55 = vpop.f32.mrb[71].mxu0 }
 0xd12   : > { %v2418_v56 = vpop.permute.xlu0 %2417 }
 0xd13   : > { %2430 = vst.msk [vmem:[#allocation2] sm:$0xff] %vm2429_vm7, %v2418_v56 }
 0xd1a   : > { %v2434_v19 = vld [vmem:[#allocation2] sm:$0xff] }
 0xd38   : > { %v2422_v57 = vpop.permute.xlu0 %2421 }
 0xd39   : > { %2432 = vst.msk [vmem:[#allocation2 + $0x10] sm:$0xff] %vm2429_vm7, %v2422_v57 }
 0xd3b   : > { %v2420_v58 = vpop.permute.xlu1 %2419 }
 0xd3c   : > { %2431 = vst.msk [vmem:[#allocation2 + $0x8] sm:$0xff] %vm2429_vm7, %v2420_v58 }
 0xd40   : > { %v2436_v63 = vld [vmem:[#allocation2 + $0x10] sm:$0xff] }
 0xd43   : > { %v2435_v59 = vld [vmem:[#allocation2 + $0x8] sm:$0xff] }
 0xd44   : > { %v2438_v60 = vpack.c.bf16 %v2435_v59, %v2434_v19 }
 0xd46   : > { %3278 = vmatprep.mubr.msk.bf16.mxu1 %vm452_vm0, %v2438_v60 }
 0xd74   : > { %v2424_v61 = vpop.permute.xlu1 %2423 }
 0xd75   : > { %2433 = vst.msk [vmem:[#allocation2 + $0x18] sm:$0xff] %vm2429_vm7, %v2424_v61 }
 0xd7c   : > { %v2437_v0 = vld [vmem:[#allocation2 + $0x18] sm:$0xff] }
 0xd7d   : > { %v2439_v1 = vpack.c.bf16 %v2437_v0, %v2436_v63  ;;  %v2966_v0 = vld [vmem:[%s4309_s6] ss:$0 sm:$0xff] }
 0xd7f   : > { %3279 = vmatmul.mubr.msk.bf16.vlgmr.msra.gmra.mrb[60].mxu1 %vm452_vm0, %v2439_v1 }
 0xd80   : > { %3291 = vmatpush3.bf16.msra.mxu1 %v3396_v44 }
 0xd81   : > { %3292 = vmatprep.subr.bf16.mxu1 %v3397_v45 }
 0xd84   : > { %3293 = vmatpush3.bf16.msra.mxu1 %v3397_v45 }
 0xd85   : > { %3294 = vmatprep.subr.bf16.mxu1 %v3398_v47 }
 0xd88   : > { %3295 = vmatpush3.bf16.msra.mxu1 %v3398_v47 }
 0xd89   : > { %3296 = vmatprep.subr.bf16.mxu1 %v3399_v48 }
 0xd8c   : > { %3297 = vmatpush3.bf16.msra.mxu1 %v3399_v48 }
 0xd8d   : > { %3298 = vmatprep.subr.bf16.mxu1 %v3400_v49 }
 0xd90   : > { %3299 = vmatpush3.bf16.msra.mxu1 %v3400_v49 }
 0xd91   : > { %3300 = vmatprep.subr.bf16.mxu1 %v3401_v50 }
 0xd94   : > { %3301 = vmatpush3.bf16.msra.mxu1 %v3401_v50 }
 0xe52   : > { %v3280_v7 = vpop.f32.mrb[60].mxu1 }
 0xe53   : > { %v2503_v22 = vpop.f32.mrb[61].mxu1  ;;  %v2512_v30 = vadd.f32 %v3280_v7, %v2961_v3 }
 0xe54   : > { %v2504_v4 = vadd.f32 %v2961_v3, %v2503_v22  ;;  %v3281_v5 = vpop.f32.mrb[62].mxu1 }
 0xe55   : > { %v2506_v2 = vpop.f32.mrb[63].mxu1  ;;  %v4172_v26 = vadd.f32 %v3485_v6, %v2512_v30  ;;  %v2515_v46 = vadd.f32 %v3281_v5, %v2961_v3 }
 0xe56   : > { %v4169_v10 = vadd.f32 %v3484_v8, %v2504_v4  ;;  %v2507_v11 = vadd.f32 %v2961_v3, %v2506_v2  ;;  %v2967_v4 = vld [vmem:[%s4310_s7] ss:$0 sm:$0xff] }
 0xe57   : > { %v4182_v16 = vadd.f32 %v3487_v15, %v2515_v46  ;;  %v2530_v17 = vsel %vm452_vm0, %v4172_v26, 0.0 }
 0xe58   : > { %v4175_v12 = vadd.f32 %v3486_v9, %v2507_v11  ;;  %v2524_v13 = vsel %vm452_vm0, %v4169_v10, 0.0 }
 0xe59   : > { %2525 = vadd.xlane.f32.xlu0 %v2524_v13  ;;  %v2533_v18 = vsel %vm452_vm0, %v4182_v16, 0.0 }
 0xe5a   : > { %v2527_v14 = vsel %vm452_vm0, %v4175_v12, 0.0 }
 0xe5b   : > { %2528 = vadd.xlane.f32.xlu1 %v2527_v14 }
 0xe5d   : > { %2531 = vadd.xlane.f32.xlu0 %v2530_v17 }
 0xe61   : > { %2534 = vadd.xlane.f32.xlu0 %v2533_v18 }
 0xee6   : > { %v2526_v20 = vpop.xlane.xlu0 %2525 }
 0xee7   : > { %v2536_v21 = vmul.f32 0.03125, %v2526_v20  ;;  %v3402_v20 = vld [vmem:[%s4313_s10 + $0x30] sm:$0xff]  }
 0xee8   : > { %v2529_v23 = vpop.xlane.xlu1 %2528  ;;  %3302 = vmatprep.subr.bf16.mxu1 %v3402_v20 }
 0xee9   : > { %v4189_v24 = vsub.f32 %v4169_v10, %v2536_v21  ;;  %v2537_v25 = vmul.f32 0.03125, %v2529_v23  ;;  %3303 = vmatpush3.bf16.msra.mxu1 %v3402_v20  ;;  %v3403_v21 = vld [vmem:[%s4313_s10 + $0x38] sm:$0xff]   ;;  %v2968_v23 = vld [vmem:[%s4312_s9] ss:$0 sm:$0xff] }
 0xeea   : > { %v2532_v27 = vpop.xlane.xlu0 %2531  ;;  %3304 = vmatprep.subr.bf16.mxu1 %v3403_v21 }
 0xeeb   : > { %v2541_v28 = vsub.f32 %v4175_v12, %v2537_v25  ;;  %v2538_v29 = vmul.f32 0.03125, %v2532_v27  ;;  %v2544_v31 = vmul.f32 %v4189_v24, %v4189_v24 }
 0xeed   : > { %v4195_v32 = vsub.f32 %v4172_v26, %v2538_v29  ;;  %v2548_v33 = vsel %vm452_vm0, %v2544_v31, 0.0  ;;  %v2545_v34 = vmul.f32 %v2541_v28, %v2541_v28  ;;  %3305 = vmatpush3.bf16.msra.mxu1 %v3403_v21 }
 0xeee   : > { %2549 = vadd.xlane.f32.xlu0 %v2548_v33  ;;  %v2535_v35 = vpop.xlane.xlu0 %2534 }
 0xeef   : > { %v2539_v36 = vmul.f32 0.03125, %v2535_v35  ;;  %v2551_v62 = vsel %vm452_vm0, %v2545_v34, 0.0  ;;  %v2546_v37 = vmul.f32 %v4195_v32, %v4195_v32 }
 0xef0   : > { %2552 = vadd.xlane.f32.xlu1 %v2551_v62 }
 0xef1   : > { %v2543_v38 = vsub.f32 %v4182_v16, %v2539_v36  ;;  %v2554_v39 = vsel %vm452_vm0, %v2546_v37, 0.0 }
 0xef2   : > { %2555 = vadd.xlane.f32.xlu0 %v2554_v39 }
 0xef3   : > { %v2547_v40 = vmul.f32 %v2543_v38, %v2543_v38 }
 0xef5   : > { %v2557_v41 = vsel %vm452_vm0, %v2547_v40, 0.0  ;;  %v2981_v40 = vld [vmem:[%s4314_s11] ss:$0 sm:$0xff] }
 0xef6   : > { %2558 = vadd.xlane.f32.xlu1 %v2557_v41 }
 0xf7b   : > { %v2550_v51 = vpop.xlane.xlu0 %2549 }
 0xf7c   : > { %v2560_v52 = vmul.f32 0.03125, %v2550_v51 }
 0xf7d   : > { %v2553_v53 = vpop.xlane.xlu1 %2552 }
 0xf7e   : > { %v2564_v54 = vadd.f32 1e-05, %v2560_v52  ;;  %v2561_v55 = vmul.f32 0.03125, %v2553_v53 }
 0xf7f   : > { %v2556_v56 = vpop.xlane.xlu0 %2555 }
 0xf80   : > { %3476 = vrsqrt.f32 %v2564_v54  ;;  %v2565_v57 = vadd.f32 1e-05, %v2561_v55  ;;  %v2562_v58 = vmul.f32 0.03125, %v2556_v56 }
 0xf82   : > { %3478 = vrsqrt.f32 %v2565_v57  ;;  %v2566_v19 = vadd.f32 1e-05, %v2562_v58 }
 0xf83   : > { %v2559_v59 = vpop.xlane.xlu1 %2558 }
 0xf84   : > { %3480 = vrsqrt.f32 %v2566_v19  ;;  %v2563_v60 = vmul.f32 0.03125, %v2559_v59 }
 0xf86   : > { %v2567_v61 = vadd.f32 1e-05, %v2563_v60 }
 0xf88   : > { %3482 = vrsqrt.f32 %v2567_v61 }
 0xf8a   : > { %v3477_v63 = vpop.eup %3476 }
 0xf8b   : > { %v2572_v1 = vmul.f32 %v3477_v63, %v4189_v24 }
 0xf8c   : > { %v3479_v3 = vpop.eup %3478 }
 0xf8d   : > { %v2573_v7 = vmul.f32 %v3479_v3, %v2541_v28  ;;  %v2582_v22 = vmul.f32 %v2966_v0, %v2572_v1 }
 0xf8e   : > { %v3481_v30 = vpop.eup %3480 }
 0xf8f   : > { %v2574_v5 = vmul.f32 %v3481_v30, %v4195_v32  ;;  %v2583_v2 = vmul.f32 %v2966_v0, %v2573_v7  ;;  %v2592_v8 = vadd.f32 %v2967_v4, %v2582_v22 }
 0xf91   : > { %v2593_v11 = vadd.f32 %v2967_v4, %v2583_v2  ;;  %v2584_v46 = vmul.f32 %v2966_v0, %v2574_v5 }
 0xf92   : > { %v3483_v6 = vpop.eup %3482 }
 0xf93   : > { %v2575_v9 = vmul.f32 %v3483_v6, %v2543_v38  ;;  %v2596_v13 = vpack.c.bf16 %v2593_v11, %v2592_v8  ;;  %v2594_v15 = vadd.f32 %v2967_v4, %v2584_v46 }
 0xf95   : > { %v2585_v14 = vmul.f32 %v2966_v0, %v2575_v9  ;;  %3286 = vmatprep.mubr.msk.bf16.mxu0 %vm452_vm0, %v2596_v13 }
 0xf97   : > { %v2595_v17 = vadd.f32 %v2967_v4, %v2585_v14 }
 0xf99   : > { %v2597_v18 = vpack.c.bf16 %v2595_v17, %v2594_v15 }
 0xf9b   : > { %3287 = vmatmul.mubr.msk.bf16.vlgmr.msra.gmra.mrb[72].mxu0 %vm452_vm0, %v2597_v18 }
0x106e   : > { %v3288_v24 = vpop.f32.mrb[72].mxu0 }
0x106f   : > { %v2670_v25 = vadd.f32 %v3288_v24, %v2968_v23  ;;  %v2661_v27 = vpop.f32.mrb[73].mxu0 }
0x1070   : > { %v2662_v28 = vadd.f32 %v2968_v23, %v2661_v27  ;;  %v3289_v29 = vpop.f32.mrb[74].mxu0 }
0x1071   : > { %v2673_v31 = vadd.f32 %v3289_v29, %v2968_v23  ;;  %v2664_v32 = vpop.f32.mrb[75].mxu0  ;;  %v2678_v34 = vmax.f32 %v2670_v25, 0.0 }
0x1072   : > { %v2665_v33 = vadd.f32 %v2968_v23, %v2664_v32  ;;  %v2676_v36 = vmax.f32 %v2662_v28, 0.0 }
0x1073   : > { %v2679_v35 = vmax.f32 %v2673_v31, 0.0 }
0x1074   : > { %v2677_v62 = vmax.f32 %v2665_v33, 0.0 }
0x1075   : > { %v2681_v37 = vpack.c.bf16 %v2679_v35, %v2678_v34 }
0x1076   : > { %v2680_v38 = vpack.c.bf16 %v2677_v62, %v2676_v36 }
0x1078   : > { %3306 = vmatprep.mubr.bf16.mxu1 %v2680_v38 }
0x1079   : > { %3307 = vmatmul.mubr.bf16.vlgmr.msra.gmra.mrb[64].mxu1 %v2681_v37 }
0x114c   : > { %v3308_v39 = vpop.f32.mrb[64].mxu1 }
0x114d   : > { %v2797_v41 = vadd.f32 %v3308_v39, %v4172_v26  ;;  %v2780_v42 = vpop.f32.mrb[65].mxu1 }
0x114e   : > { %v2795_v43 = vadd.f32 %v2780_v42, %v4169_v10  ;;  %v3309_v44 = vpop.f32.mrb[66].mxu1 }
0x114f   : > { %v2808_v45 = vadd.f32 %v2981_v40, %v2797_v41  ;;  %v2798_v47 = vadd.f32 %v3309_v44, %v4182_v16  ;;  %v2783_v48 = vpop.f32.mrb[67].mxu1 }
0x1150   : > { %v2806_v49 = vadd.f32 %v2981_v40, %v2795_v43  ;;  %v2796_v50 = vadd.f32 %v2783_v48, %v4175_v12 }
0x1151   : > { %2812 = vst.msk [vmem:[%s437_s21 + $0x10] sm:$0xff] %vm452_vm0, %v2808_v45  ;;  %v2809_v26 = vadd.f32 %v2981_v40, %v2798_v47 }
0x1152   : > { %2810 = vst.msk [vmem:[%s437_s21] sm:$0xff] %vm452_vm0, %v2806_v49  ;;  %v2807_v10 = vadd.f32 %v2981_v40, %v2796_v50 }
0x1153   : > { %2813 = vst.msk [vmem:[%s437_s21 + $0x18] sm:$0xff] %vm452_vm0, %v2809_v26 }
0x1154   : > { %2811 = vst.msk [vmem:[%s437_s21 + $0x8] sm:$0xff] %vm452_vm0, %v2807_v10 }
0x1155   : > { %3557 = shalt.err (!%p3554_p11)
}
0x1156   : > { %s3558_s28 = scalar_lea.hbm %s4257_s15, 512  ;;  %s3562_s17 = scalar_lea.hbm %s4315_s12, 1024 }
0x1157   : > { %p3559_p13 = scmp.ne.s32.totalorder %s4257_s15, %s3558_s28  ;;  %p3563_p6 = scmp.lt.u32.totalorder %s4257_s15, %s4315_s12 }
0x1158   : > { %p3564_p9 = scmp.lt.u32.totalorder %s3562_s17, %s3558_s28  ;;  %p3566_p12 = scmp.lt.u32.totalorder %s3558_s28, %s4257_s15 }
0x1159   : > { %p3560_p5 = pnand %p3559_p13, %p4340_p1 }
0x115a   : > { %p3565_p10 = por %p3564_p9, %p3563_p6 }
0x115b   : > { %p3561_p0 = pneg %p3560_p5 }
0x115c   : > { %p3567_p2 = por %p3566_p12, %p3565_p10 }
0x115e   : > { %p3568_p3 = pnand %p3567_p2, %p3561_p0 }
0x1160   : > { %3571 = shalt.err (!%p3568_p3)
}
0x1161   : > { %s3638_s14 = smov 128  }
0x1162   : > { %3318 = dma.vmem_to_hbm [thread:$0]  (%p4340_p1), %s4251_s24, 512, %s4257_s15, %s4261_s25, %s3638_s14, %s3638_s14, %s3634_s16  }
0x1163 PF: > { %s4341_s18 = sld [smem:[#allocation14_spill]]  ;;  %s4342_s20 = sld [smem:[#allocation12_spill]] }
0x1164   : > { %s4343_s26 = sld [smem:[#allocation17_spill]] }
0x1169   : > { %p3335_p4 = scmp.ge.s32.totalorder %s4341_s18, 2  ;;  %s2843_s23 = sand.u32 1, %s4342_s20  }
0x116a   : > { %p4344_p7 = scmp.ne.s32.totalorder %s4343_s26, 0  ;;  %s2844_s27 = scalar_lea.sflag [#allocation5], %s2843_s23 }
0x116c   : > { %p3328_p8 = pnand %p3335_p4, %p4344_p7 }
0x116e   : > { %3597 = dma.done.wait (!%p3328_p8), %s2844_s27, 512  }
0x116f   : > { %3599 = vsyncadd (!%p3328_p8), %s2844_s27, 4294966784  ;;  %s4345_s24 = sld [smem:[#allocation15_spill]]  ;;  %s4346_s28 = sld [smem:[#allocation13_spill]] }
0x1170   : > { %s4347_s23 = sld [smem:[#allocation16_spill]]  ;;  %s4348_s21 = smov %s3606_s22 }
0x1175   : > { %p24_p11 = scmp.ge.s32.totalorder %s4345_s24, 4   ;;  %s4349_s22 = smov %s4346_s28 }
0x1177   :  { %26 = sbr.rel (!%p24_p11) target bundleno = 5 (0x5), region = 112 }
0x117e   :  { %2849 = vsyncpa [#allocation4], 1 }
0x117f   :  { %2851 = vsyncpa [#allocation4 + $0x1], 1 }
0x1180   :  { %2852 = vsyncpa [#allocation7], 1 }
0x1181   :  { %2853 = vsyncpa [#allocation5], 1 }
0x1182   :  { %2855 = vsyncpa [#allocation5 + $0x1], 1 }

</bundles_post_ra>
